<compile_context>
chip_gen: v6e
topology: v6e:2x2x1
jax: 0.10.0
libtpu: 0.0.40
codegen_flags: <defaults>
</compile_context>

<pallas_src>
import functools

import jax
import jax.numpy as jnp
from jax import lax
from jax.experimental import pallas as pl
from jax.experimental.pallas import tpu as pltpu


def _dagnn_kernel(adj_ref, feats_ref, s_ref, o_ref, *, k):
    adj = adj_ref[...]          # (Np, Np) f32, adj[i, j] = 1 iff edge j -> i
    h = feats_ref[...]          # (Np, Dp) f32
    s_row = s_ref[...]          # (1, Dp)  f32 gating vector, lane-dense layout

    # in_degrees().clamp(min=1) ** -0.5   (row-sum -> XLU, rsqrt -> EUP)
    degs = jnp.maximum(jnp.sum(adj, axis=1, keepdims=True), 1.0)   # (Np, 1)
    norm = lax.rsqrt(degs)                                         # (Np, 1)

    def gate(ht):
        # logits[n] = sum_d ht[n, d] * s[d]  -- trans_b contraction, no transpose.
        logits = lax.dot_general(
            ht, s_row,
            dimension_numbers=(((1,), (1,)), ((), ())),
            preferred_element_type=jnp.float32)                    # (Np, 1)
        return 1.0 / (1.0 + jnp.exp(-logits))                      # sigmoid

    # hop-0 term: original features, gated.
    acc = gate(h) * h

    def hop(_, carry):
        h, acc = carry
        h = h * norm                                               # D^{-1/2}
        h = jnp.dot(adj, h, preferred_element_type=jnp.float32)    # aggregate (MXU)
        h = h * norm                                               # D^{-1/2}
        acc = acc + gate(h) * h
        return h, acc

    _, acc = lax.fori_loop(0, k, hop, (h, acc), unroll=True)
    o_ref[...] = acc


def dagnn_conv(adj, feats, s, k):
    """adj: (N, N) dense aggregation matrix, feats: (N, D), s: (D, 1)."""
    n, d = feats.shape
    assert adj.shape == (n, n) and s.shape == (d, 1)

    n_pad = (-n) % 8      # f32 sublane multiple
    d_pad = (-d) % 128    # lane multiple -> lane-dense stores
    np_, dp_ = n + n_pad, d + d_pad

    adj_p = jnp.pad(adj, ((0, n_pad), (0, n_pad))) if n_pad else adj
    feats_p = (jnp.pad(feats, ((0, n_pad), (0, d_pad)))
               if (n_pad or d_pad) else feats)
    s_p = jnp.pad(s, ((0, d_pad), (0, 0))) if d_pad else s
    s_row = s_p.reshape(1, dp_)   # contiguous reshape, not a transpose

    # adj + feats + out + (h, acc live copies) + s + norm/degs, with slack.
    vmem_bytes = 4 * (np_ * np_ + 4 * np_ * dp_ + dp_ + 2 * np_)
    vmem_limit = int(min(max(2 * vmem_bytes, 4 << 20), 100 << 20))

    out = pl.pallas_call(
        functools.partial(_dagnn_kernel, k=k),
        out_shape=jax.ShapeDtypeStruct((np_, dp_), jnp.float32),
        in_specs=[
            pl.BlockSpec(memory_space=pltpu.MemorySpace.VMEM),  # adj
            pl.BlockSpec(memory_space=pltpu.MemorySpace.VMEM),  # feats
            pl.BlockSpec(memory_space=pltpu.MemorySpace.VMEM),  # s (1, Dp)
        ],
        out_specs=pl.BlockSpec(memory_space=pltpu.MemorySpace.VMEM),
        compiler_params=pltpu.CompilerParams(vmem_limit_bytes=vmem_limit),
    )(adj_p, feats_p, s_row)
    return out[:n, :d]


if __name__ == "__main__":
    key = jax.random.PRNGKey(0)
    k_adj, k_x, k_s = jax.random.split(key, 3)

    N, D, K = 128, 128, 4   # lane-dense demo sizes (D % 128 == 0, N % 8 == 0)

    # Deterministic random digraph as a dense aggregation matrix (~5% density).
    adj = (jax.random.uniform(k_adj, (N, N)) < 0.05).astype(jnp.float32)
    feats = jax.random.normal(k_x, (N, D), dtype=jnp.float32)

    # reset_parameters(): xavier_uniform_(s, gain=calculate_gain('sigmoid')=1.0).
    # torch fan_in/fan_out for an (in_dim, 1) tensor: fan_in=1, fan_out=in_dim.
    bound = float(jnp.sqrt(6.0 / (1.0 + D)))
    s = jax.random.uniform(k_s, (D, 1), dtype=jnp.float32,
                           minval=-bound, maxval=bound)

    out = dagnn_conv(adj, feats, s, K)
    out = jax.block_until_ready(out)

    # Plain-JAX reference of the exact DAGNNConv forward (stack/sigmoid/matmul),
    # matmuls forced to HIGHEST precision so it is a true f32 reference.
    hp = lax.Precision.HIGHEST
    degs = jnp.maximum(jnp.sum(adj, axis=1), 1.0)
    norm = (degs ** -0.5)[:, None]
    h = feats
    results = [h]
    for _ in range(K):
        h = h * norm
        h = jnp.dot(adj, h, precision=hp)
        h = h * norm
        results.append(h)
    H = jnp.stack(results, axis=1)                          # (N, K+1, D)
    S = jax.nn.sigmoid(jnp.matmul(H, s, precision=hp))      # (N, K+1, 1)
    S = jnp.transpose(S, (0, 2, 1))                         # (N, 1, K+1)
    ref = jnp.squeeze(jnp.matmul(S, H, precision=hp), axis=1)

    max_err = jnp.max(jnp.abs(out - ref))
    assert jnp.allclose(out, ref, atol=2e-2, rtol=2e-2), (
        f"mismatch vs reference: max abs err {max_err}")

    print("KERNEL_OK")
</pallas_src>

<mosaic_0001>
module attributes {stable_mosaic.version = 11 : i64} {
  func.func @_dagnn_kernel(%arg0: memref<128x128xf32, #tpu.memory_space<vmem>>, %arg1: memref<128x128xf32, #tpu.memory_space<vmem>>, %arg2: memref<1x128xf32, #tpu.memory_space<vmem>>, %arg3: memref<128x128xf32, #tpu.memory_space<vmem>>) attributes {dimension_semantics = [], scalar_prefetch = 0 : i64, scratch_operands = 0 : i64, tpu.core_type = #tpu.core_type<tc>} {
    %c0 = arith.constant 0 : index
    %c0_0 = arith.constant 0 : index
    %0 = vector.load %arg0[%c0, %c0_0] : memref<128x128xf32, #tpu.memory_space<vmem>>, vector<128x128xf32>
    %c0_1 = arith.constant 0 : index
    %c0_2 = arith.constant 0 : index
    %1 = vector.load %arg1[%c0_1, %c0_2] : memref<128x128xf32, #tpu.memory_space<vmem>>, vector<128x128xf32>
    %c0_3 = arith.constant 0 : index
    %c0_4 = arith.constant 0 : index
    %2 = vector.load %arg2[%c0_3, %c0_4] : memref<1x128xf32, #tpu.memory_space<vmem>>, vector<1x128xf32>
    %cst = arith.constant dense<0.000000e+00> : vector<128xf32>
    %3 = vector.multi_reduction <add>, %0, %cst [1] : vector<128x128xf32> to vector<128xf32>
    %4 = vector.shape_cast %3 : vector<128xf32> to vector<128x1xf32>
    %cst_5 = arith.constant 1.000000e+00 : f32
    %5 = vector.broadcast %cst_5 : f32 to vector<128x1xf32>
    %6 = arith.maximumf %4, %5 : vector<128x1xf32>
    %7 = math.rsqrt %6 : vector<128x1xf32>
    %cst_6 = arith.constant dense<0.000000e+00> : vector<128x1xf32>
    %8 = tpu.matmul %1, %2, %cst_6 {dimension_numbers = #tpu.dot_dimension_numbers<[1], [1], [0], [0], [0, 0, 1, 0], [], []>} : vector<128x128xf32>, vector<1x128xf32>, vector<128x1xf32> -> vector<128x1xf32>
    %cst_7 = arith.constant 0.000000e+00 : f32
    %9 = vector.broadcast %cst_7 : f32 to vector<128x1xf32>
    %10 = arith.subf %9, %8 : vector<128x1xf32>
    %11 = math.exp %10 : vector<128x1xf32>
    %cst_8 = arith.constant 1.000000e+00 : f32
    %12 = vector.broadcast %cst_8 : f32 to vector<128x1xf32>
    %13 = arith.addf %12, %11 : vector<128x1xf32>
    %cst_9 = arith.constant 1.000000e+00 : f32
    %14 = vector.broadcast %cst_9 : f32 to vector<128x1xf32>
    %15 = arith.divf %14, %13 : vector<128x1xf32>
    %16 = vector.broadcast %15 : vector<128x1xf32> to vector<128x128xf32>
    %17 = arith.mulf %16, %1 : vector<128x128xf32>
    %c0_i32 = arith.constant 0 : i32
    %18 = vector.broadcast %7 : vector<128x1xf32> to vector<128x128xf32>
    %19 = arith.mulf %1, %18 : vector<128x128xf32>
    %cst_10 = arith.constant dense<0.000000e+00> : vector<128x128xf32>
    %20 = tpu.matmul %0, %19, %cst_10 {dimension_numbers = #tpu.dot_dimension_numbers<[1], [0], [0], [1], [0, 0, 1, 1], [], []>} : vector<128x128xf32>, vector<128x128xf32>, vector<128x128xf32> -> vector<128x128xf32>
    %21 = vector.broadcast %7 : vector<128x1xf32> to vector<128x128xf32>
    %22 = arith.mulf %20, %21 : vector<128x128xf32>
    %cst_11 = arith.constant dense<0.000000e+00> : vector<128x1xf32>
    %23 = tpu.matmul %22, %2, %cst_11 {dimension_numbers = #tpu.dot_dimension_numbers<[1], [1], [0], [0], [0, 0, 1, 0], [], []>} : vector<128x128xf32>, vector<1x128xf32>, vector<128x1xf32> -> vector<128x1xf32>
    %cst_12 = arith.constant 0.000000e+00 : f32
    %24 = vector.broadcast %cst_12 : f32 to vector<128x1xf32>
    %25 = arith.subf %24, %23 : vector<128x1xf32>
    %26 = math.exp %25 : vector<128x1xf32>
    %cst_13 = arith.constant 1.000000e+00 : f32
    %27 = vector.broadcast %cst_13 : f32 to vector<128x1xf32>
    %28 = arith.addf %27, %26 : vector<128x1xf32>
    %cst_14 = arith.constant 1.000000e+00 : f32
    %29 = vector.broadcast %cst_14 : f32 to vector<128x1xf32>
    %30 = arith.divf %29, %28 : vector<128x1xf32>
    %31 = vector.broadcast %30 : vector<128x1xf32> to vector<128x128xf32>
    %32 = arith.mulf %31, %22 : vector<128x128xf32>
    %33 = arith.addf %17, %32 : vector<128x128xf32>
    %c1_i32 = arith.constant 1 : i32
    %34 = vector.broadcast %7 : vector<128x1xf32> to vector<128x128xf32>
    %35 = arith.mulf %22, %34 : vector<128x128xf32>
    %cst_15 = arith.constant dense<0.000000e+00> : vector<128x128xf32>
    %36 = tpu.matmul %0, %35, %cst_15 {dimension_numbers = #tpu.dot_dimension_numbers<[1], [0], [0], [1], [0, 0, 1, 1], [], []>} : vector<128x128xf32>, vector<128x128xf32>, vector<128x128xf32> -> vector<128x128xf32>
    %37 = vector.broadcast %7 : vector<128x1xf32> to vector<128x128xf32>
    %38 = arith.mulf %36, %37 : vector<128x128xf32>
    %cst_16 = arith.constant dense<0.000000e+00> : vector<128x1xf32>
    %39 = tpu.matmul %38, %2, %cst_16 {dimension_numbers = #tpu.dot_dimension_numbers<[1], [1], [0], [0], [0, 0, 1, 0], [], []>} : vector<128x128xf32>, vector<1x128xf32>, vector<128x1xf32> -> vector<128x1xf32>
    %cst_17 = arith.constant 0.000000e+00 : f32
    %40 = vector.broadcast %cst_17 : f32 to vector<128x1xf32>
    %41 = arith.subf %40, %39 : vector<128x1xf32>
    %42 = math.exp %41 : vector<128x1xf32>
    %cst_18 = arith.constant 1.000000e+00 : f32
    %43 = vector.broadcast %cst_18 : f32 to vector<128x1xf32>
    %44 = arith.addf %43, %42 : vector<128x1xf32>
    %cst_19 = arith.constant 1.000000e+00 : f32
    %45 = vector.broadcast %cst_19 : f32 to vector<128x1xf32>
    %46 = arith.divf %45, %44 : vector<128x1xf32>
    %47 = vector.broadcast %46 : vector<128x1xf32> to vector<128x128xf32>
    %48 = arith.mulf %47, %38 : vector<128x128xf32>
    %49 = arith.addf %33, %48 : vector<128x128xf32>
    %c2_i32 = arith.constant 2 : i32
    %50 = vector.broadcast %7 : vector<128x1xf32> to vector<128x128xf32>
    %51 = arith.mulf %38, %50 : vector<128x128xf32>
    %cst_20 = arith.constant dense<0.000000e+00> : vector<128x128xf32>
    %52 = tpu.matmul %0, %51, %cst_20 {dimension_numbers = #tpu.dot_dimension_numbers<[1], [0], [0], [1], [0, 0, 1, 1], [], []>} : vector<128x128xf32>, vector<128x128xf32>, vector<128x128xf32> -> vector<128x128xf32>
    %53 = vector.broadcast %7 : vector<128x1xf32> to vector<128x128xf32>
    %54 = arith.mulf %52, %53 : vector<128x128xf32>
    %cst_21 = arith.constant dense<0.000000e+00> : vector<128x1xf32>
    %55 = tpu.matmul %54, %2, %cst_21 {dimension_numbers = #tpu.dot_dimension_numbers<[1], [1], [0], [0], [0, 0, 1, 0], [], []>} : vector<128x128xf32>, vector<1x128xf32>, vector<128x1xf32> -> vector<128x1xf32>
    %cst_22 = arith.constant 0.000000e+00 : f32
    %56 = vector.broadcast %cst_22 : f32 to vector<128x1xf32>
    %57 = arith.subf %56, %55 : vector<128x1xf32>
    %58 = math.exp %57 : vector<128x1xf32>
    %cst_23 = arith.constant 1.000000e+00 : f32
    %59 = vector.broadcast %cst_23 : f32 to vector<128x1xf32>
    %60 = arith.addf %59, %58 : vector<128x1xf32>
    %cst_24 = arith.constant 1.000000e+00 : f32
    %61 = vector.broadcast %cst_24 : f32 to vector<128x1xf32>
    %62 = arith.divf %61, %60 : vector<128x1xf32>
    %63 = vector.broadcast %62 : vector<128x1xf32> to vector<128x128xf32>
    %64 = arith.mulf %63, %54 : vector<128x128xf32>
    %65 = arith.addf %49, %64 : vector<128x128xf32>
    %c3_i32 = arith.constant 3 : i32
    %66 = vector.broadcast %7 : vector<128x1xf32> to vector<128x128xf32>
    %67 = arith.mulf %54, %66 : vector<128x128xf32>
    %cst_25 = arith.constant dense<0.000000e+00> : vector<128x128xf32>
    %68 = tpu.matmul %0, %67, %cst_25 {dimension_numbers = #tpu.dot_dimension_numbers<[1], [0], [0], [1], [0, 0, 1, 1], [], []>} : vector<128x128xf32>, vector<128x128xf32>, vector<128x128xf32> -> vector<128x128xf32>
    %69 = vector.broadcast %7 : vector<128x1xf32> to vector<128x128xf32>
    %70 = arith.mulf %68, %69 : vector<128x128xf32>
    %cst_26 = arith.constant dense<0.000000e+00> : vector<128x1xf32>
    %71 = tpu.matmul %70, %2, %cst_26 {dimension_numbers = #tpu.dot_dimension_numbers<[1], [1], [0], [0], [0, 0, 1, 0], [], []>} : vector<128x128xf32>, vector<1x128xf32>, vector<128x1xf32> -> vector<128x1xf32>
    %cst_27 = arith.constant 0.000000e+00 : f32
    %72 = vector.broadcast %cst_27 : f32 to vector<128x1xf32>
    %73 = arith.subf %72, %71 : vector<128x1xf32>
    %74 = math.exp %73 : vector<128x1xf32>
    %cst_28 = arith.constant 1.000000e+00 : f32
    %75 = vector.broadcast %cst_28 : f32 to vector<128x1xf32>
    %76 = arith.addf %75, %74 : vector<128x1xf32>
    %cst_29 = arith.constant 1.000000e+00 : f32
    %77 = vector.broadcast %cst_29 : f32 to vector<128x1xf32>
    %78 = arith.divf %77, %76 : vector<128x1xf32>
    %79 = vector.broadcast %78 : vector<128x1xf32> to vector<128x128xf32>
    %80 = arith.mulf %79, %70 : vector<128x128xf32>
    %81 = arith.addf %65, %80 : vector<128x128xf32>
    %c0_30 = arith.constant 0 : index
    %c0_31 = arith.constant 0 : index
    %82 = vector.load %arg3[%c0_30, %c0_31] : memref<128x128xf32, #tpu.memory_space<vmem>>, vector<128x128xf32>
    tpu.vector_store %arg3[%c0_30, %c0_31], %81 {strides = array<i32>} : memref<128x128xf32, #tpu.memory_space<vmem>>, vector<128x128xf32>,
    return
  }
}

</mosaic_0001>

<bundles_post_ra>
// kernel: tpu_custom_call.1
= control target key start
LH: loop header
LB: loop body
LE: loop exit
PB: predicated region body
PF: predicated region fallthrough
CT: control target
= control target key end

     0   :  { %8 = vsyncpa [#allocation3], 0  ;;  %s3535_s0 = inlined_call_operand.hbm [shape: f32[128,128], index: 0, kind: input, shape index: {}]   ;;  %s3536_s1 = inlined_call_operand.hbm [shape: f32[128,128], index: 1, kind: input, shape index: {}]   ;;  %s3537_s2 = inlined_call_operand.vmem [shape: f32[1,128], index: 2, kind: input, shape index: {}]   ;;  %s3538_s3 = inlined_call_operand.hbm [shape: f32[128,128], index: 3, kind: output, shape index: {}]  }
   0x1   :  { %9 = vsyncpa [#allocation6], 0 }
   0x2   :  { %10 = vsyncpa [#allocation4], 0  ;;  %s2554_s12 = smov [#allocation2]  }
   0x3   :  { %s16_s13 = sshll.u32 %s2554_s12, 4  ;;  %s17_s13 = int_to_ptr.vmem [resolvable:$true] %s16_s13 }
   0x4   :  { %s2496_s14 = scalar_lea.vmem %s17_s13, 2048  ;;  %p2501_p1 = scmp.lt.s32.totalorder %s17_s13, %s17_s13 }
   0x5   :  { %p2497_p0 = scmp.ne.s32.totalorder %s17_s13, %s2496_s14  ;;  %p2502_p2 = scmp.lt.s32.totalorder %s2496_s14, %s2496_s14 }
   0x7   :  { %p2503_p3 = por %p2502_p2, %p2501_p1 }
   0x9   :  { %p2504_p4 = pnand %p2503_p3, %p2497_p0 }
   0xb   :  { %2507 = shalt.err (!%p2504_p4)
}
   0xc   :  { %s2555_s15 = smov 128   ;;  %s2556_s16 = smov 8  }
   0xd   :  { %22 = dma.hbm_to_vmem [thread:$0]  %s3535_s0, 2048, %s17_s13, [#allocation3], %s2555_s15, %s2555_s15, %s2556_s16  }
   0xe   :  { %s2557_s19 = smov [#allocation5]  }
   0xf   :  { %s28_s20 = sshll.u32 %s2557_s19, 4  ;;  %s29_s20 = int_to_ptr.vmem [resolvable:$true] %s28_s20 }
  0x10   :  { %s2516_s21 = scalar_lea.vmem %s29_s20, 2048  ;;  %p2521_p6 = scmp.lt.s32.totalorder %s29_s20, %s29_s20 }
  0x11   :  { %p2517_p5 = scmp.ne.s32.totalorder %s29_s20, %s2516_s21  ;;  %p2522_p7 = scmp.lt.s32.totalorder %s2516_s21, %s2516_s21 }
  0x13   :  { %p2523_p8 = por %p2522_p7, %p2521_p6 }
  0x15   :  { %p2524_p9 = pnand %p2523_p8, %p2517_p5 }
  0x17   :  { %2527 = shalt.err (!%p2524_p9)
}
  0x18   :  { %34 = dma.hbm_to_vmem [thread:$0]  %s3536_s1, 2048, %s29_s20, [#allocation6], %s2555_s15, %s2555_s15, %s2556_s16  }
  0x19   :  { %2548 = dma.done.wait [#allocation3], 2048  }
  0x1a   :  { %2549 = vsyncadd [#allocation3], 4294965248 }
  0x1b   :  { %2550 = dma.done.wait [#allocation6], 2048  }
  0x1c   :  { %2551 = vsyncadd [#allocation6], 4294965248  ;;  %v2591_v0 = vld [vmem:[#allocation2 + $0x78] sm:$0xff]  ;;  %v2593_v1 = vld [vmem:[#allocation2 + $0x68] sm:$0xff] }
  0x1d   :  { %106 = vadd.xlane.f32.xlu0 %v2591_v0  ;;  %102 = vadd.xlane.f32.xlu1 %v2593_v1  ;;  %v2597_v2 = vld [vmem:[#allocation2 + $0x70] sm:$0xff]  ;;  %v2599_v3 = vld [vmem:[#allocation2 + $0x60] sm:$0xff]  ;;  %v2605_v5 = vld [vmem:[#allocation2 + $0x58] sm:$0xff] }
  0x1e   :  { %v2603_v4 = vld [vmem:[#allocation2] sm:$0xff]  ;;  %v2607_v6 = vld [vmem:[#allocation2 + $0x50] sm:$0xff]  ;;  %v2613_v7 = vld [vmem:[#allocation2 + $0x48] sm:$0xff] }
  0x1f   :  { %1913 = vmatprep.mubr.f32.mxu0 %v2603_v4  ;;  %1969 = vmatprep.mubr.f32.mxu1 %v2603_v4  ;;  %v2615_v8 = vld [vmem:[#allocation2 + $0x40] sm:$0xff]  ;;  %v2619_v9 = vld [vmem:[#allocation2 + $0x38] sm:$0xff]  ;;  %v2621_v10 = vld [vmem:[#allocation2 + $0x30] sm:$0xff] }
  0x20   :  { %v2625_v11 = vld [vmem:[#allocation2 + $0x28] sm:$0xff]  ;;  %v2627_v12 = vld [vmem:[#allocation2 + $0x20] sm:$0xff]  ;;  %v2631_v13 = vld [vmem:[#allocation2 + $0x18] sm:$0xff] }
  0x21   :  { %104 = vadd.xlane.f32.xlu0 %v2597_v2  ;;  %100 = vadd.xlane.f32.xlu1 %v2599_v3  ;;  %v2633_v14 = vld [vmem:[#allocation2 + $0x10] sm:$0xff]  ;;  %v2637_v15 = vld [vmem:[#allocation2 + $0x8] sm:$0xff]  ;;  %v2643_v17 = vld [vmem:[#allocation5] sm:$0xff] }
  0x22   :  { %v2641_v16 = vld [vmem:[#allocation5 + $0x8] sm:$0xff]  ;;  %v2648_v18 = vld [vmem:[%s3537_s2] ss:$0 sm:$0xff]  ;;  %v2654_v21 = vld [vmem:[#allocation5 + $0x18] sm:$0xff] }
  0x23   :  { %v147_v19 = vmul.f32 %v2648_v18, %v2641_v16  ;;  %v146_v20 = vmul.f32 %v2648_v18, %v2643_v17  ;;  %v2656_v22 = vld [vmem:[#allocation5 + $0x10] sm:$0xff]  ;;  %v149_v23 = vmul.f32 %v2648_v18, %v2654_v21  ;;  %v2662_v25 = vld [vmem:[#allocation5 + $0x28] sm:$0xff]  ;;  %v2664_v26 = vld [vmem:[#allocation5 + $0x20] sm:$0xff] }
  0x24   :  { %v148_v24 = vmul.f32 %v2648_v18, %v2656_v22  ;;  %v151_v27 = vmul.f32 %v2648_v18, %v2662_v25  ;;  %v150_v28 = vmul.f32 %v2648_v18, %v2664_v26  ;;  %v2670_v29 = vld [vmem:[#allocation5 + $0x38] sm:$0xff]  ;;  %v2672_v30 = vld [vmem:[#allocation5 + $0x30] sm:$0xff]  ;;  %v2678_v33 = vld [vmem:[#allocation5 + $0x48] sm:$0xff] }
  0x25   :  { %98 = vadd.xlane.f32.xlu0 %v2605_v5  ;;  %96 = vadd.xlane.f32.xlu1 %v2607_v6  ;;  %v153_v31 = vmul.f32 %v2648_v18, %v2670_v29  ;;  %v152_v32 = vmul.f32 %v2648_v18, %v2672_v30  ;;  %v2680_v34 = vld [vmem:[#allocation5 + $0x40] sm:$0xff]  ;;  %v155_v35 = vmul.f32 %v2648_v18, %v2678_v33  ;;  %v2686_v37 = vld [vmem:[#allocation5 + $0x58] sm:$0xff]  ;;  %v2688_v38 = vld [vmem:[#allocation5 + $0x50] sm:$0xff] }
  0x26   :  { %v154_v36 = vmul.f32 %v2648_v18, %v2680_v34  ;;  %v157_v39 = vmul.f32 %v2648_v18, %v2686_v37  ;;  %v156_v40 = vmul.f32 %v2648_v18, %v2688_v38  ;;  %v72_v41 = vld [vmem:[#allocation5 + $0x68] sm:$0xff]  ;;  %v71_v42 = vld [vmem:[#allocation5 + $0x60] sm:$0xff]  ;;  %v2696_v61 = vld [vmem:[#allocation5 + $0x78] sm:$0xff] }
  0x27   :  { %v159_v43 = vmul.f32 %v2648_v18, %v72_v41  ;;  %v158_v44 = vmul.f32 %v2648_v18, %v71_v42 }
  0x29   :  { %94 = vadd.xlane.f32.xlu0 %v2613_v7  ;;  %92 = vadd.xlane.f32.xlu1 %v2615_v8 }
  0x2d   :  { %90 = vadd.xlane.f32.xlu0 %v2619_v9  ;;  %88 = vadd.xlane.f32.xlu1 %v2621_v10 }
  0x31   :  { %86 = vadd.xlane.f32.xlu0 %v2625_v11  ;;  %84 = vadd.xlane.f32.xlu1 %v2627_v12 }
  0x35   :  { %82 = vadd.xlane.f32.xlu0 %v2631_v13  ;;  %80 = vadd.xlane.f32.xlu1 %v2633_v14 }
  0x39   :  { %78 = vadd.xlane.f32.xlu0 %v2637_v15  ;;  %76 = vadd.xlane.f32.xlu1 %v2603_v4 }
  0x3d   :  { %164 = vadd.xlane.f32.xlu1 %v147_v19  ;;  %162 = vadd.xlane.f32.xlu0 %v146_v20 }
  0x41   :  { %168 = vadd.xlane.f32.xlu1 %v149_v23  ;;  %166 = vadd.xlane.f32.xlu0 %v148_v24 }
  0x45   :  { %172 = vadd.xlane.f32.xlu1 %v151_v27  ;;  %170 = vadd.xlane.f32.xlu0 %v150_v28  ;;  %v2702_v27 = vld [vmem:[#allocation5 + $0x70] sm:$0xff] }
  0x49   :  { %176 = vadd.xlane.f32.xlu1 %v153_v31  ;;  %174 = vadd.xlane.f32.xlu0 %v152_v32 }
  0x4d   :  { %180 = vadd.xlane.f32.xlu1 %v155_v35  ;;  %178 = vadd.xlane.f32.xlu0 %v154_v36 }
  0x51   :  { %184 = vadd.xlane.f32.xlu1 %v157_v39  ;;  %182 = vadd.xlane.f32.xlu0 %v156_v40 }
  0x55   :  { %188 = vadd.xlane.f32.xlu1 %v159_v43  ;;  %186 = vadd.xlane.f32.xlu0 %v158_v44 }
  0xa6   :  { %v107_v45 = vpop.xlane.xlu0 %106  ;;  %v103_v46 = vpop.xlane.xlu1 %102 }
  0xa7   :  { %v123_v47 = vmax.f32 %v107_v45, 1.0  ;;  %v121_v48 = vmax.f32 %v103_v46, 1.0 }
  0xa9   :  { %2110 = vrsqrt.f32 %v123_v47 }
  0xaa   :  { %v105_v49 = vpop.xlane.xlu0 %104  ;;  %v101_v50 = vpop.xlane.xlu1 %100  ;;  %2112 = vrsqrt.f32 %v121_v48 }
  0xab   :  { %v122_v51 = vmax.f32 %v105_v49, 1.0  ;;  %v120_v52 = vmax.f32 %v101_v50, 1.0 }
  0xad   :  { %2114 = vrsqrt.f32 %v122_v51 }
  0xae   :  { %2116 = vrsqrt.f32 %v120_v52  ;;  %v99_v53 = vpop.xlane.xlu0 %98  ;;  %v97_v54 = vpop.xlane.xlu1 %96 }
  0xaf   :  { %v119_v55 = vmax.f32 %v99_v53, 1.0  ;;  %v118_v56 = vmax.f32 %v97_v54, 1.0 }
  0xb1   :  { %2118 = vrsqrt.f32 %v119_v55 }
  0xb2   :  { %2120 = vrsqrt.f32 %v118_v56  ;;  %v95_v57 = vpop.xlane.xlu0 %94  ;;  %v93_v58 = vpop.xlane.xlu1 %92 }
  0xb3   :  { %v117_v59 = vmax.f32 %v95_v57, 1.0  ;;  %v116_v60 = vmax.f32 %v93_v58, 1.0 }
  0xb5   :  { %2122 = vrsqrt.f32 %v117_v59 }
  0xb6   :  { %v2698_v62 = vpop.eup %2110  ;;  %2124 = vrsqrt.f32 %v116_v60  ;;  %v91_v63 = vpop.xlane.xlu0 %90 }
  0xb7   :  { %3571 = vst [vmem:[#allocation11_spill] sm:$0xff] %v2698_v62  ;;  %v89_v19 = vpop.xlane.xlu1 %88  ;;  %v115_v20 = vmax.f32 %v91_v63, 1.0  ;;  %v321_v23 = vmul.f32 %v2698_v62, %v2696_v61  ;;  %v2704_v28 = vpop.eup %2112 }
  0xb8   :  { %v114_v24 = vmax.f32 %v89_v19, 1.0  ;;  %v319_v44 = vmul.f32 %v2704_v28, %v72_v41 }
  0xb9   :  { %2126 = vrsqrt.f32 %v115_v20  ;;  %1881 = vmatprep.subr.mxu0 %v321_v23 }
  0xba   :  { %v2706_v31 = vpop.eup %2114  ;;  %1882 = vmatpush3.msra.mxu0 %v321_v23  ;;  %2128 = vrsqrt.f32 %v114_v24  ;;  %v87_v32 = vpop.xlane.xlu0 %86 }
  0xbb   :  { %3572 = vst [vmem:[#allocation12_spill] sm:$0xff] %v2706_v31  ;;  %v85_v35 = vpop.xlane.xlu1 %84  ;;  %v2708_v36 = vpop.eup %2116  ;;  %v113_v39 = vmax.f32 %v87_v32, 1.0  ;;  %v320_v40 = vmul.f32 %v2706_v31, %v2702_v27 }
  0xbc   :  { %v112_v43 = vmax.f32 %v85_v35, 1.0  ;;  %v318_v45 = vmul.f32 %v2708_v36, %v71_v42 }
  0xbd   :  { %2130 = vrsqrt.f32 %v113_v39  ;;  %1883 = vmatprep.subr.mxu0 %v320_v40 }
  0xbe   :  { %v2714_v46 = vpop.eup %2118  ;;  %1884 = vmatpush3.msra.mxu0 %v320_v40  ;;  %2132 = vrsqrt.f32 %v112_v43  ;;  %v83_v47 = vpop.xlane.xlu0 %82  ;;  %v161_v43 = vmul.f32 %v2648_v18, %v2696_v61 }
  0xbf   :  { %v81_v48 = vpop.xlane.xlu1 %80  ;;  %v2716_v49 = vpop.eup %2120  ;;  %1885 = vmatprep.subr.mxu0 %v319_v44  ;;  %v111_v50 = vmax.f32 %v83_v47, 1.0  ;;  %v317_v52 = vmul.f32 %v2714_v46, %v2686_v37 }
  0xc0   :  { %v110_v51 = vmax.f32 %v81_v48, 1.0  ;;  %1886 = vmatpush3.msra.mxu0 %v319_v44  ;;  %v316_v41 = vmul.f32 %v2716_v49, %v2688_v38  ;;  %192 = vadd.xlane.f32.xlu1 %v161_v43  ;;  %v160_v44 = vmul.f32 %v2648_v18, %v2702_v27 }
  0xc1   :  { %2134 = vrsqrt.f32 %v111_v50  ;;  %1887 = vmatprep.subr.mxu0 %v318_v45 }
  0xc2   :  { %v2722_v42 = vpop.eup %2122  ;;  %1888 = vmatpush3.msra.mxu0 %v318_v45  ;;  %2136 = vrsqrt.f32 %v110_v51  ;;  %v79_v53 = vpop.xlane.xlu0 %78  ;;  %190 = vadd.xlane.f32.xlu0 %v160_v44 }
  0xc3   :  { %v77_v54 = vpop.xlane.xlu1 %76  ;;  %v2724_v55 = vpop.eup %2124  ;;  %1889 = vmatprep.subr.mxu0 %v317_v52  ;;  %v109_v56 = vmax.f32 %v79_v53, 1.0  ;;  %v315_v37 = vmul.f32 %v2722_v42, %v2678_v33 }
  0xc4   :  { %v108_v57 = vmax.f32 %v77_v54, 1.0  ;;  %1890 = vmatpush3.msra.mxu0 %v317_v52  ;;  %v314_v38 = vmul.f32 %v2724_v55, %v2680_v34 }
  0xc5   :  { %2138 = vrsqrt.f32 %v109_v56  ;;  %1891 = vmatprep.subr.mxu0 %v316_v41 }
  0xc6   :  { %v2730_v58 = vpop.eup %2126  ;;  %1892 = vmatpush3.msra.mxu0 %v316_v41  ;;  %2140 = vrsqrt.f32 %v108_v57 }
  0xc7   :  { %v2732_v59 = vpop.eup %2128  ;;  %1893 = vmatprep.subr.mxu0 %v315_v37  ;;  %v313_v60 = vmul.f32 %v2730_v58, %v2670_v29 }
  0xc8   :  { %1894 = vmatpush3.msra.mxu0 %v315_v37  ;;  %v312_v33 = vmul.f32 %v2732_v59, %v2672_v30 }
  0xc9   :  { %1895 = vmatprep.subr.mxu0 %v314_v38 }
  0xca   :  { %v2738_v63 = vpop.eup %2130  ;;  %1896 = vmatpush3.msra.mxu0 %v314_v38 }
  0xcb   :  { %v2740_v19 = vpop.eup %2132  ;;  %1897 = vmatprep.subr.mxu0 %v313_v60  ;;  %v311_v34 = vmul.f32 %v2738_v63, %v2662_v25 }
  0xcc   :  { %1898 = vmatpush3.msra.mxu0 %v313_v60  ;;  %v310_v20 = vmul.f32 %v2740_v19, %v2664_v26 }
  0xcd   :  { %1899 = vmatprep.subr.mxu0 %v312_v33 }
  0xce   :  { %v2746_v29 = vpop.eup %2134  ;;  %1900 = vmatpush3.msra.mxu0 %v312_v33 }
  0xcf   :  { %v2748_v23 = vpop.eup %2136  ;;  %1901 = vmatprep.subr.mxu0 %v311_v34  ;;  %v309_v30 = vmul.f32 %v2746_v29, %v2654_v21 }
  0xd0   :  { %1902 = vmatpush3.msra.mxu0 %v311_v34  ;;  %v308_v24 = vmul.f32 %v2748_v23, %v2656_v22 }
  0xd1   :  { %1903 = vmatprep.subr.mxu0 %v310_v20 }
  0xd2   :  { %v2754_v32 = vpop.eup %2138  ;;  %1904 = vmatpush3.msra.mxu0 %v310_v20 }
  0xd3   :  { %v2756_v35 = vpop.eup %2140  ;;  %1905 = vmatprep.subr.mxu0 %v309_v30  ;;  %v307_v39 = vmul.f32 %v2754_v32, %v2641_v16 }
  0xd4   :  { %1906 = vmatpush3.msra.mxu0 %v309_v30  ;;  %v306_v40 = vmul.f32 %v2756_v35, %v2643_v17 }
  0xd5   :  { %1907 = vmatprep.subr.mxu0 %v308_v24 }
  0xd6   :  { %1908 = vmatpush3.msra.mxu0 %v308_v24 }
  0xd7   :  { %1909 = vmatprep.subr.mxu0 %v307_v39 }
  0xd8   :  { %1910 = vmatpush3.msra.mxu0 %v307_v39 }
  0xd9   :  { %1911 = vmatprep.subr.mxu0 %v306_v40 }
  0xda   :  { %1912 = vmatpush3.msra.mxu0 %v306_v40 }
  0xdb   :  { %1914 = vmatmul.mubr.f32.vlgmr.msra.gmra.mxu0 %v2637_v15 }
  0xdc   :  { %1916 = vmatprep.mubr.f32.mxu0 %v2633_v14 }
  0xdf   :  { %1917 = vmatmul.mubr.f32.gmra.mxu0 %v2631_v13 }
  0xe0   :  { %1919 = vmatprep.mubr.f32.mxu0 %v2627_v12 }
  0xe3   :  { %1920 = vmatmul.mubr.f32.gmra.mxu0 %v2625_v11 }
  0xe4   :  { %1922 = vmatprep.mubr.f32.mxu0 %v2621_v10 }
  0xe7   :  { %1923 = vmatmul.mubr.f32.gmra.mxu0 %v2619_v9 }
  0xe8   :  { %1925 = vmatprep.mubr.f32.mxu0 %v2615_v8 }
  0xeb   :  { %1926 = vmatmul.mubr.f32.gmra.mxu0 %v2613_v7 }
  0xec   :  { %1928 = vmatprep.mubr.f32.mxu0 %v2607_v6 }
  0xef   :  { %1929 = vmatmul.mubr.f32.gmra.mxu0 %v2605_v5 }
  0xf0   :  { %1931 = vmatprep.mubr.f32.mxu0 %v2599_v3 }
  0xf3   :  { %1932 = vmatmul.mubr.f32.gmra.mxu0 %v2593_v1 }
  0xf4   :  { %1934 = vmatprep.mubr.f32.mxu0 %v2597_v2 }
  0xf7   :  { %1935 = vmatmul.mubr.f32.gmra.mxu0 %v2591_v0 }
  0xf8   :  { %2025 = vmatprep.mubr.f32.mxu0 %v2603_v4 }
 0x19b   :  { %v1915_v45 = vpop.f32.mrf.mxu0 }
 0x19c   :  { %v2783_v47 = vmul.f32 %v2754_v32, %v1915_v45 }
 0x19d   :  { %v388_v48 = vpop.f32.mrf.mxu0 }
 0x19e   :  { %v2786_v50 = vmul.f32 %v2756_v35, %v388_v48  ;;  %v484_v51 = vmul.f32 %v2648_v18, %v2783_v47 }
 0x19f   :  { %v1918_v52 = vpop.f32.mrf.mxu0 }
 0x1a0   :  { %v2791_v41 = vmul.f32 %v2746_v29, %v1918_v52  ;;  %501 = vadd.xlane.f32.xlu1 %v484_v51  ;;  %v483_v61 = vmul.f32 %v2648_v18, %v2786_v50 }
 0x1a1   :  { %v398_v27 = vpop.f32.mrf.mxu0 }
 0x1a2   :  { %v2796_v53 = vmul.f32 %v2748_v23, %v398_v27  ;;  %499 = vadd.xlane.f32.xlu0 %v483_v61  ;;  %v486_v54 = vmul.f32 %v2648_v18, %v2791_v41 }
 0x1a3   :  { %v1921_v56 = vpop.f32.mrf.mxu0 }
 0x1a4   :  { %v2801_v57 = vmul.f32 %v2738_v63, %v1921_v56  ;;  %505 = vadd.xlane.f32.xlu1 %v486_v54  ;;  %v485_v37 = vmul.f32 %v2648_v18, %v2796_v53 }
 0x1a5   :  { %v408_v38 = vpop.f32.mrf.mxu0 }
 0x1a6   :  { %v2806_v60 = vmul.f32 %v2740_v19, %v408_v38  ;;  %503 = vadd.xlane.f32.xlu0 %v485_v37  ;;  %v488_v33 = vmul.f32 %v2648_v18, %v2801_v57 }
 0x1a7   :  { %v1924_v34 = vpop.f32.mrf.mxu0 }
 0x1a8   :  { %v2811_v20 = vmul.f32 %v2730_v58, %v1924_v34  ;;  %509 = vadd.xlane.f32.xlu1 %v488_v33  ;;  %v487_v30 = vmul.f32 %v2648_v18, %v2806_v60 }
 0x1a9   :  { %v418_v24 = vpop.f32.mrf.mxu0 }
 0x1aa   :  { %v2816_v39 = vmul.f32 %v2732_v59, %v418_v24  ;;  %507 = vadd.xlane.f32.xlu0 %v487_v30  ;;  %v490_v40 = vmul.f32 %v2648_v18, %v2811_v20 }
 0x1ab   :  { %v1927_v43 = vpop.f32.mrf.mxu0 }
 0x1ac   :  { %v2821_v44 = vmul.f32 %v2722_v42, %v1927_v43  ;;  %513 = vadd.xlane.f32.xlu1 %v490_v40  ;;  %v489_v45 = vmul.f32 %v2648_v18, %v2816_v39 }
 0x1ad   :  { %v428_v48 = vpop.f32.mrf.mxu0 }
 0x1ae   :  { %v2826_v51 = vmul.f32 %v2724_v55, %v428_v48  ;;  %511 = vadd.xlane.f32.xlu0 %v489_v45  ;;  %v492_v52 = vmul.f32 %v2648_v18, %v2821_v44 }
 0x1af   :  { %v1930_v61 = vpop.f32.mrf.mxu0 }
 0x1b0   :  { %v2831_v27 = vmul.f32 %v2714_v46, %v1930_v61  ;;  %517 = vadd.xlane.f32.xlu1 %v492_v52  ;;  %v491_v54 = vmul.f32 %v2648_v18, %v2826_v51 }
 0x1b1   :  { %v438_v56 = vpop.f32.mrf.mxu0 }
 0x1b2   :  { %v2836_v37 = vmul.f32 %v2716_v49, %v438_v56  ;;  %515 = vadd.xlane.f32.xlu0 %v491_v54  ;;  %v494_v38 = vmul.f32 %v2648_v18, %v2831_v27 }
 0x1b3   :  { %v1933_v33 = vpop.f32.mrf.mxu0 }
 0x1b4   :  { %v2841_v34 = vmul.f32 %v2704_v28, %v1933_v33  ;;  %521 = vadd.xlane.f32.xlu1 %v494_v38  ;;  %v493_v30 = vmul.f32 %v2648_v18, %v2836_v37 }
 0x1b5   :  { %v448_v24 = vpop.f32.mrf.mxu0 }
 0x1b6   :  { %v2846_v40 = vmul.f32 %v2708_v36, %v448_v24  ;;  %519 = vadd.xlane.f32.xlu0 %v493_v30  ;;  %v496_v43 = vmul.f32 %v2648_v18, %v2841_v34  ;;  %v672_v24 = vmul.f32 %v2704_v28, %v2841_v34 }
 0x1b7   :  { %v1936_v45 = vpop.f32.mrf.mxu0 }
 0x1b8   :  { %v2851_v48 = vmul.f32 %v2698_v62, %v1936_v45  ;;  %525 = vadd.xlane.f32.xlu1 %v496_v43  ;;  %v495_v52 = vmul.f32 %v2648_v18, %v2846_v40  ;;  %v671_v43 = vmul.f32 %v2708_v36, %v2846_v40  ;;  %v670_v45 = vmul.f32 %v2714_v46, %v2831_v27 }
 0x1b9   :  { %v458_v61 = vpop.f32.mrf.mxu0 }
 0x1ba   :  { %3573 = vst [vmem:[#allocation13_spill] sm:$0xff] %v2851_v48  ;;  %v2856_v54 = vmul.f32 %v2706_v31, %v458_v61  ;;  %523 = vadd.xlane.f32.xlu0 %v495_v52  ;;  %v674_v56 = vmul.f32 %v2698_v62, %v2851_v48  ;;  %v498_v38 = vmul.f32 %v2648_v18, %v2851_v48 }
 0x1bb   :  { %v668_v52 = vmul.f32 %v2722_v42, %v2821_v44  ;;  %v667_v61 = vmul.f32 %v2724_v55, %v2826_v51 }
 0x1bc   :  { %3574 = vst [vmem:[#allocation14_spill] sm:$0xff] %v2856_v54  ;;  %1937 = vmatprep.subr.mxu1 %v674_v56  ;;  %529 = vadd.xlane.f32.xlu1 %v498_v38  ;;  %v673_v33 = vmul.f32 %v2706_v31, %v2856_v54  ;;  %v497_v30 = vmul.f32 %v2648_v18, %v2856_v54 }
 0x1bd   :  { %1938 = vmatpush3.msra.mxu1 %v674_v56  ;;  %v669_v18 = vmul.f32 %v2716_v49, %v2836_v37  ;;  %v666_v56 = vmul.f32 %v2730_v58, %v2811_v20  ;;  %v665_v38 = vmul.f32 %v2732_v59, %v2816_v39 }
 0x1be   :  { %1939 = vmatprep.subr.mxu1 %v673_v33  ;;  %527 = vadd.xlane.f32.xlu0 %v497_v30  ;;  %v663_v30 = vmul.f32 %v2740_v19, %v2806_v60 }
 0x1bf   :  { %1940 = vmatpush3.msra.mxu1 %v673_v33  ;;  %v664_v33 = vmul.f32 %v2738_v63, %v2801_v57 }
 0x1c0   :  { %1941 = vmatprep.subr.mxu1 %v672_v24 }
 0x1c1   :  { %1942 = vmatpush3.msra.mxu1 %v672_v24  ;;  %v662_v24 = vmul.f32 %v2746_v29, %v2791_v41 }
 0x1c2   :  { %1943 = vmatprep.subr.mxu1 %v671_v43 }
 0x1c3   :  { %1944 = vmatpush3.msra.mxu1 %v671_v43  ;;  %v661_v43 = vmul.f32 %v2748_v23, %v2796_v53 }
 0x1c4   :  { %1945 = vmatprep.subr.mxu1 %v670_v45 }
 0x1c5   :  { %1946 = vmatpush3.msra.mxu1 %v670_v45  ;;  %v660_v45 = vmul.f32 %v2754_v32, %v2783_v47 }
 0x1c6   :  { %1947 = vmatprep.subr.mxu1 %v669_v18 }
 0x1c7   :  { %1948 = vmatpush3.msra.mxu1 %v669_v18  ;;  %v659_v18 = vmul.f32 %v2756_v35, %v2786_v50 }
 0x1c8   :  { %1949 = vmatprep.subr.mxu1 %v668_v52 }
 0x1c9   :  { %1950 = vmatpush3.msra.mxu1 %v668_v52 }
 0x1ca   :  { %1951 = vmatprep.subr.mxu1 %v667_v61 }
 0x1cb   :  { %1952 = vmatpush3.msra.mxu1 %v667_v61 }
 0x1cc   :  { %1953 = vmatprep.subr.mxu1 %v666_v56 }
 0x1cd   :  { %1954 = vmatpush3.msra.mxu1 %v666_v56 }
 0x1ce   :  { %1955 = vmatprep.subr.mxu1 %v665_v38 }
 0x1cf   :  { %1956 = vmatpush3.msra.mxu1 %v665_v38 }
 0x1d0   :  { %1957 = vmatprep.subr.mxu1 %v664_v33 }
 0x1d1   :  { %1958 = vmatpush3.msra.mxu1 %v664_v33 }
 0x1d2   :  { %1959 = vmatprep.subr.mxu1 %v663_v30 }
 0x1d3   :  { %1960 = vmatpush3.msra.mxu1 %v663_v30 }
 0x1d4   :  { %1961 = vmatprep.subr.mxu1 %v662_v24 }
 0x1d5   :  { %1962 = vmatpush3.msra.mxu1 %v662_v24 }
 0x1d6   :  { %1963 = vmatprep.subr.mxu1 %v661_v43 }
 0x1d7   :  { %1964 = vmatpush3.msra.mxu1 %v661_v43 }
 0x1d8   :  { %1965 = vmatprep.subr.mxu1 %v660_v45 }
 0x1d9   :  { %1966 = vmatpush3.msra.mxu1 %v660_v45 }
 0x1da   :  { %1967 = vmatprep.subr.mxu1 %v659_v18 }
 0x1db   :  { %1968 = vmatpush3.msra.mxu1 %v659_v18 }
 0x1dc   :  { %1970 = vmatmul.mubr.f32.vlgmr.msra.gmra.mxu1 %v2637_v15 }
 0x1dd   :  { %1972 = vmatprep.mubr.f32.mxu1 %v2633_v14 }
 0x1e0   :  { %1973 = vmatmul.mubr.f32.gmra.mxu1 %v2631_v13 }
 0x1e1   :  { %1975 = vmatprep.mubr.f32.mxu1 %v2627_v12 }
 0x1e4   :  { %1976 = vmatmul.mubr.f32.gmra.mxu1 %v2625_v11  ;;  %v165_v11 = vpop.xlane.xlu1 %164 }
 0x1e5   :  { %1978 = vmatprep.mubr.f32.mxu1 %v2621_v10 }
 0x1e8   :  { %1979 = vmatmul.mubr.f32.gmra.mxu1 %v2619_v9  ;;  %v163_v9 = vpop.xlane.xlu0 %162  ;;  %v169_v10 = vpop.xlane.xlu1 %168 }
 0x1e9   :  { %1981 = vmatprep.mubr.f32.mxu1 %v2615_v8  ;;  %v194_v14 = vsub.f32 0.0, %v163_v9 }
 0x1eb   :  { %v210_v52 = vmul.f32 1.442695, %v194_v14 }
 0x1ec   :  { %1982 = vmatmul.mubr.f32.gmra.mxu1 %v2613_v7  ;;  %v167_v8 = vpop.xlane.xlu0 %166  ;;  %v173_v12 = vpop.xlane.xlu1 %172 }
 0x1ed   :  { %1984 = vmatprep.mubr.f32.mxu1 %v2607_v6  ;;  %v195_v6 = vsub.f32 0.0, %v165_v11 }
 0x1ef   :  { %v212_v15 = vmul.f32 1.442695, %v195_v6 }
 0x1f0   :  { %1985 = vmatmul.mubr.f32.gmra.mxu1 %v2605_v5  ;;  %v171_v7 = vpop.xlane.xlu0 %170  ;;  %v177_v13 = vpop.xlane.xlu1 %176 }
 0x1f1   :  { %1987 = vmatprep.mubr.f32.mxu1 %v2599_v3  ;;  %v197_v3 = vsub.f32 0.0, %v169_v10  ;;  %2142 = vpow2.f32 %v212_v15  ;;  %v198_v33 = vsub.f32 0.0, %v171_v7  ;;  %v201_v18 = vsub.f32 0.0, %v177_v13 }
 0x1f2   :  { %2144 = vpow2.f32 %v210_v52 }
 0x1f3   :  { %v218_v43 = vmul.f32 1.442695, %v198_v33  ;;  %v224_v6 = vmul.f32 1.442695, %v201_v18 }
 0x1f4   :  { %1988 = vmatmul.mubr.f32.gmra.mxu1 %v2593_v1  ;;  %v175_v5 = vpop.xlane.xlu0 %174  ;;  %v196_v1 = vsub.f32 0.0, %v167_v8  ;;  %v181_v61 = vpop.xlane.xlu1 %180 }
 0x1f5   :  { %1990 = vmatprep.mubr.f32.mxu1 %v2597_v2  ;;  %v200_v11 = vsub.f32 0.0, %v175_v5  ;;  %v203_v14 = vsub.f32 0.0, %v181_v61 }
 0x1f6   :  { %v214_v56 = vmul.f32 1.442695, %v196_v1 }
 0x1f7   :  { %v222_v15 = vmul.f32 1.442695, %v200_v11  ;;  %v228_v13 = vmul.f32 1.442695, %v203_v14 }
 0x1f8   :  { %1991 = vmatmul.mubr.f32.gmra.mxu1 %v2591_v0  ;;  %v179_v2 = vpop.xlane.xlu0 %178  ;;  %v216_v0 = vmul.f32 1.442695, %v197_v3  ;;  %v185_v38 = vpop.xlane.xlu1 %184 }
 0x1f9   :  { %2081 = vmatprep.mubr.f32.mxu1 %v2603_v4  ;;  %v199_v4 = vsub.f32 0.0, %v173_v12  ;;  %v202_v12 = vsub.f32 0.0, %v179_v2 }
 0x1fa   :  { %2146 = vpow2.f32 %v216_v0 }
 0x1fb   :  { %2148 = vpow2.f32 %v214_v56  ;;  %v220_v24 = vmul.f32 1.442695, %v199_v4  ;;  %v226_v5 = vmul.f32 1.442695, %v202_v12  ;;  %v205_v4 = vsub.f32 0.0, %v185_v38 }
 0x1fc   :  { %v183_v30 = vpop.xlane.xlu0 %182  ;;  %v189_v45 = vpop.xlane.xlu1 %188 }
 0x1fd   :  { %2150 = vpow2.f32 %v220_v24  ;;  %v204_v61 = vsub.f32 0.0, %v183_v30  ;;  %v232_v18 = vmul.f32 1.442695, %v205_v4  ;;  %v207_v30 = vsub.f32 0.0, %v189_v45 }
 0x1fe   :  { %v2143_v10 = vpop.eup %2142  ;;  %2152 = vpow2.f32 %v218_v43 }
 0x1ff   :  { %v2145_v8 = vpop.eup %2144  ;;  %v243_v52 = vadd.f32 1.0, %v2143_v10  ;;  %2154 = vpow2.f32 %v224_v6  ;;  %v230_v6 = vmul.f32 1.442695, %v204_v61 }
 0x200   :  { %v2910_v9 = vpop.xlane.xlu0 %186  ;;  %v2912_v3 = vpop.xlane.xlu1 %192  ;;  %v242_v1 = vadd.f32 1.0, %v2145_v8  ;;  %2156 = vpow2.f32 %v222_v15 }
 0x201   :  { %3575 = vst [vmem:[#allocation15_spill] sm:$0xff] %v2912_v3  ;;  %2158 = vrcp.f32 %v243_v52 }
 0x202   :  { %2160 = vrcp.f32 %v242_v1 }
 0x203   :  { %2162 = vpow2.f32 %v228_v13 }
 0x204   :  { %v2914_v0 = vpop.xlane.xlu0 %190  ;;  %2164 = vpow2.f32 %v226_v5  ;;  %v206_v5 = vsub.f32 0.0, %v2910_v9 }
 0x205   :  { %3576 = vst [vmem:[#allocation16_spill] sm:$0xff] %v2914_v0 }
 0x207   :  { %v2147_v7 = vpop.eup %2146 }
 0x208   :  { %v2149_v56 = vpop.eup %2148  ;;  %v245_v33 = vadd.f32 1.0, %v2147_v7 }
 0x209   :  { %v244_v24 = vadd.f32 1.0, %v2149_v56 }
 0x20a   :  { %v2151_v10 = vpop.eup %2150  ;;  %2166 = vrcp.f32 %v245_v33 }
 0x20b   :  { %2168 = vrcp.f32 %v244_v24  ;;  %v2153_v15 = vpop.eup %2152  ;;  %v247_v52 = vadd.f32 1.0, %v2151_v10  ;;  %v234_v10 = vmul.f32 1.442695, %v206_v5 }
 0x20c   :  { %v246_v13 = vadd.f32 1.0, %v2153_v15  ;;  %v2155_v61 = vpop.eup %2154 }
 0x229   :  { %v502_v43 = vpop.xlane.xlu1 %501 }
 0x22a   :  { %v532_v2 = vsub.f32 0.0, %v502_v43  ;;  %v236_v43 = vmul.f32 1.442695, %v207_v30 }
 0x22b   :  { %v500_v11 = vpop.xlane.xlu0 %499 }
 0x22c   :  { %v549_v8 = vmul.f32 1.442695, %v532_v2  ;;  %v531_v54 = vsub.f32 0.0, %v500_v11  ;;  %v2157_v2 = vpop.eup %2156 }
 0x22d   :  { %v506_v14 = vpop.xlane.xlu1 %505  ;;  %v2917_v11 = vpop.eup %2158 }
 0x22e   :  { %2170 = vpow2.f32 %v549_v8  ;;  %v547_v38 = vmul.f32 1.442695, %v531_v54  ;;  %v534_v12 = vsub.f32 0.0, %v506_v14 }
 0x22f   :  { %2172 = vpow2.f32 %v232_v18  ;;  %v504_v7 = vpop.xlane.xlu0 %503 }
 0x230   :  { %2174 = vpow2.f32 %v547_v38  ;;  %v553_v1 = vmul.f32 1.442695, %v534_v12  ;;  %v533_v56 = vsub.f32 0.0, %v504_v7  ;;  %v249_v38 = vadd.f32 1.0, %v2155_v61 }
 0x231   :  { %2176 = vpow2.f32 %v230_v6  ;;  %v510_v4 = vpop.xlane.xlu1 %509  ;;  %v2919_v6 = vpop.eup %2160 }
 0x232   :  { %2178 = vpow2.f32 %v553_v1  ;;  %v551_v33 = vmul.f32 1.442695, %v533_v56  ;;  %v536_v24 = vsub.f32 0.0, %v510_v4  ;;  %v2163_v15 = vpop.eup %2162  ;;  %v248_v56 = vadd.f32 1.0, %v2157_v2 }
 0x233   :  { %2180 = vrcp.f32 %v247_v52  ;;  %v508_v54 = vpop.xlane.xlu0 %507  ;;  %v2921_v52 = vpop.eup %2164  ;;  %v251_v62 = vadd.f32 1.0, %v2163_v15 }
 0x234   :  { %2182 = vpow2.f32 %v551_v33  ;;  %v557_v18 = vmul.f32 1.442695, %v536_v24  ;;  %v535_v45 = vsub.f32 0.0, %v508_v54  ;;  %v2923_v1 = vpop.eup %2166 }
 0x235   :  { %2184 = vrcp.f32 %v246_v13  ;;  %v514_v8 = vpop.xlane.xlu1 %513  ;;  %v2925_v5 = vpop.eup %2168 }
 0x236   :  { %2186 = vpow2.f32 %v557_v18  ;;  %v555_v9 = vmul.f32 1.442695, %v535_v45  ;;  %v538_v14 = vsub.f32 0.0, %v514_v8 }
 0x237   :  { %2188 = vpow2.f32 %v236_v43  ;;  %v512_v12 = vpop.xlane.xlu0 %511 }
 0x238   :  { %2190 = vpow2.f32 %v555_v9  ;;  %v561_v30 = vmul.f32 1.442695, %v538_v14  ;;  %v537_v7 = vsub.f32 0.0, %v512_v12 }
 0x239   :  { %2192 = vpow2.f32 %v234_v10  ;;  %v518_v13 = vpop.xlane.xlu1 %517 }
 0x23a   :  { %2194 = vpow2.f32 %v561_v30  ;;  %v559_v4 = vmul.f32 1.442695, %v537_v7  ;;  %v540_v33 = vsub.f32 0.0, %v518_v13 }
 0x23b   :  { %v2171_v24 = vpop.eup %2170  ;;  %2196 = vrcp.f32 %v249_v38  ;;  %v516_v61 = vpop.xlane.xlu0 %515 }
 0x23c   :  { %v2173_v43 = vpop.eup %2172  ;;  %v580_v54 = vadd.f32 1.0, %v2171_v24  ;;  %2198 = vpow2.f32 %v559_v4  ;;  %v565_v18 = vmul.f32 1.442695, %v540_v33  ;;  %v539_v45 = vsub.f32 0.0, %v516_v61 }
 0x23d   :  { %v2175_v8 = vpop.eup %2174  ;;  %2200 = vrcp.f32 %v248_v56  ;;  %v522_v9 = vpop.xlane.xlu1 %521 }
 0x23e   :  { %v2177_v14 = vpop.eup %2176  ;;  %2202 = vrcp.f32 %v580_v54  ;;  %v579_v2 = vadd.f32 1.0, %v2175_v8  ;;  %v563_v10 = vmul.f32 1.442695, %v539_v45  ;;  %v542_v12 = vsub.f32 0.0, %v522_v9 }
 0x23f   :  { %v2179_v48 = vpop.eup %2178  ;;  %2204 = vpow2.f32 %v565_v18  ;;  %v520_v30 = vpop.xlane.xlu0 %519  ;;  %v252_v15 = vadd.f32 1.0, %v2177_v14 }
 0x240   :  { %v2927_v7 = vpop.eup %2180  ;;  %2206 = vrcp.f32 %v579_v2  ;;  %v582_v38 = vadd.f32 1.0, %v2179_v48  ;;  %v569_v13 = vmul.f32 1.442695, %v542_v12  ;;  %v541_v24 = vsub.f32 0.0, %v520_v30 }
 0x241   :  { %v2183_v4 = vpop.eup %2182  ;;  %2208 = vpow2.f32 %v563_v10  ;;  %v526_v33 = vpop.xlane.xlu1 %525 }
 0x242   :  { %v2929_v61 = vpop.eup %2184  ;;  %2210 = vrcp.f32 %v582_v38  ;;  %v581_v56 = vadd.f32 1.0, %v2183_v4  ;;  %v567_v54 = vmul.f32 1.442695, %v541_v24  ;;  %v544_v8 = vsub.f32 0.0, %v526_v33 }
 0x243   :  { %v2187_v45 = vpop.eup %2186  ;;  %2212 = vpow2.f32 %v569_v13  ;;  %v524_v9 = vpop.xlane.xlu0 %523  ;;  %v250_v13 = vadd.f32 1.0, %v2921_v52  ;;  %v293_v52 = vmul.f32 %v2923_v1, %v2654_v21 }
 0x244   :  { %v2189_v18 = vpop.eup %2188  ;;  %2214 = vrcp.f32 %v581_v56  ;;  %v584_v0 = vadd.f32 1.0, %v2187_v45  ;;  %v573_v3 = vmul.f32 1.442695, %v544_v8  ;;  %v543_v2 = vsub.f32 0.0, %v524_v9 }
 0x245   :  { %v2191_v48 = vpop.eup %2190  ;;  %2216 = vpow2.f32 %v567_v54  ;;  %v291_v56 = vmul.f32 %v2917_v11, %v2641_v16  ;;  %v253_v8 = vadd.f32 1.0, %v2173_v43  ;;  %v255_v11 = vadd.f32 1.0, %v2189_v18 }
 0x246   :  { %v2193_v12 = vpop.eup %2192  ;;  %2218 = vrcp.f32 %v584_v0  ;;  %v583_v10 = vadd.f32 1.0, %v2191_v48  ;;  %v571_v30 = vmul.f32 1.442695, %v543_v2 }
 0x247   :  { %v2195_v31 = vpop.eup %2194  ;;  %2220 = vpow2.f32 %v573_v3  ;;  %v290_v3 = vmul.f32 %v2919_v6, %v2643_v17  ;;  %v292_v17 = vmul.f32 %v2925_v5, %v2656_v22  ;;  %v254_v14 = vadd.f32 1.0, %v2193_v12 }
 0x248   :  { %v2197_v38 = vpop.eup %2196  ;;  %2222 = vrcp.f32 %v583_v10  ;;  %v586_v24 = vadd.f32 1.0, %v2195_v31 }
 0x249   :  { %v2199_v4 = vpop.eup %2198  ;;  %2224 = vpow2.f32 %v571_v30 }
 0x24a   :  { %v2201_v33 = vpop.eup %2200  ;;  %2226 = vrcp.f32 %v586_v24  ;;  %v585_v54 = vadd.f32 1.0, %v2199_v4 }
 0x24b   :  { %v2203_v0 = vpop.eup %2202  ;;  %2228 = vrcp.f32 %v251_v62 }
 0x24c   :  { %v2205_v45 = vpop.eup %2204  ;;  %v628_v31 = vmul.f32 %v2203_v0, %v2783_v47  ;;  %2230 = vrcp.f32 %v585_v54  ;;  %v2462_v54 = vld [vmem:[#allocation5 + $0x38] sm:$0xff] }
 0x24d   :  { %v2207_v9 = vpop.eup %2206  ;;  %2232 = vrcp.f32 %v250_v13  ;;  %v588_v2 = vadd.f32 1.0, %v2205_v45  ;;  %v294_v13 = vmul.f32 %v2929_v61, %v2664_v26  ;;  %v297_v0 = vmul.f32 %v2462_v54, %v2197_v38  ;;  %v2463_v26 = vld [vmem:[#allocation5 + $0x30] sm:$0xff] }
 0x24e   :  { %v2209_v16 = vpop.eup %2208  ;;  %2234 = vrcp.f32 %v253_v8  ;;  %v2939_v43 = vadd.f32 %v628_v31, %v291_v56  ;;  %v627_v62 = vmul.f32 %v2207_v9, %v2786_v50  ;;  %v295_v50 = vmul.f32 %v2927_v7, %v2662_v25 }
 0x24f   :  { %v2211_v48 = vpop.eup %2210  ;;  %2236 = vrcp.f32 %v588_v2  ;;  %v587_v47 = vadd.f32 1.0, %v2209_v16  ;;  %v296_v61 = vmul.f32 %v2463_v26, %v2201_v33 }
 0x250   :  { %v2213_v6 = vpop.eup %2212  ;;  %2238 = vrcp.f32 %v252_v15  ;;  %v2944_v10 = vadd.f32 %v627_v62, %v290_v3  ;;  %v630_v21 = vmul.f32 %v2211_v48, %v2791_v41  ;;  %v2464_v62 = vld [vmem:[#allocation5 + $0x48] sm:$0xff] }
 0x251   :  { %v2215_v1 = vpop.eup %2214  ;;  %2240 = vrcp.f32 %v587_v47  ;;  %v590_v18 = vadd.f32 1.0, %v2213_v6  ;;  %v2465_v6 = vld [vmem:[#allocation5 + $0x40] sm:$0xff] }
 0x252   :  { %v2217_v30 = vpop.eup %2216  ;;  %2242 = vrcp.f32 %v255_v11  ;;  %v2949_v24 = vadd.f32 %v630_v21, %v293_v52  ;;  %v629_v22 = vmul.f32 %v2215_v1, %v2796_v53  ;;  %v2466_v1 = vld [vmem:[#allocation5 + $0x58] sm:$0xff] }
 0x253   :  { %v2219_v5 = vpop.eup %2218  ;;  %2244 = vrcp.f32 %v590_v18  ;;  %v589_v4 = vadd.f32 1.0, %v2217_v30 }
 0x254   :  { %v2221_v12 = vpop.eup %2220  ;;  %2246 = vrcp.f32 %v254_v14  ;;  %v2954_v41 = vadd.f32 %v629_v22, %v292_v17  ;;  %v632_v56 = vmul.f32 %v2219_v5, %v2801_v57  ;;  %v2467_v5 = vld [vmem:[#allocation5 + $0x50] sm:$0xff] }
 0x255   :  { %v2223_v8 = vpop.eup %2222  ;;  %2248 = vrcp.f32 %v589_v4  ;;  %v592_v25 = vadd.f32 1.0, %v2221_v12 }
 0x256   :  { %v2225_v7 = vpop.eup %2224  ;;  %v2957_v45 = vadd.f32 %v632_v56, %v295_v50  ;;  %v631_v53 = vmul.f32 %v2223_v8, %v2806_v60  ;;  %v2468_v8 = vld [vmem:[#allocation5 + $0x68] sm:$0xff] }
 0x257   :  { %v2227_v3 = vpop.eup %2226  ;;  %2250 = vrcp.f32 %v592_v25  ;;  %v591_v15 = vadd.f32 1.0, %v2225_v7 }
 0x258   :  { %3577 = vst [vmem:[#allocation17_spill] sm:$0xff] %v2957_v45  ;;  %v2229_v31 = vpop.eup %2228  ;;  %v2960_v9 = vadd.f32 %v631_v53, %v294_v13  ;;  %v634_v57 = vmul.f32 %v2227_v3, %v2811_v20 }
 0x259   :  { %v2231_v52 = vpop.eup %2230  ;;  %2252 = vrcp.f32 %v591_v15  ;;  %v299_v60 = vmul.f32 %v2464_v62, %v2229_v31 }
 0x25a   :  { %3578 = vst [vmem:[#allocation18_spill] sm:$0xff] %v2960_v9  ;;  %v2233_v2 = vpop.eup %2232  ;;  %v2963_v16 = vadd.f32 %v634_v57, %v297_v0  ;;  %v633_v38 = vmul.f32 %v2231_v52, %v2816_v39  ;;  %v2469_v0 = vld [vmem:[#allocation5 + $0x60] sm:$0xff] }
 0x25b   :  { %v2235_v11 = vpop.eup %2234  ;;  %v298_v33 = vmul.f32 %v2465_v6, %v2233_v2  ;;  %v2995_v2 = vld [vmem:[%s3537_s2] ss:$0 sm:$0xff]  ;;  %s2558_s2 = smov [#allocation7]  }
 0x25c   :  { %3579 = vst [vmem:[#allocation19_spill] sm:$0xff] %v2963_v16  ;;  %v2237_v48 = vpop.eup %2236  ;;  %v2966_v17 = vadd.f32 %v633_v38, %v296_v61  ;;  %v301_v18 = vmul.f32 %v2466_v1, %v2235_v11  ;;  %s1739_s26 = sshll.u32 %s2558_s2, 4  ;;  %s1740_s26 = int_to_ptr.vmem [resolvable:$true] %s1739_s26 }
 0x25d   :  { %v2239_v47 = vpop.eup %2238  ;;  %v636_v14 = vmul.f32 %v2237_v48, %v2821_v44  ;;  %s2528_s27 = scalar_lea.vmem %s1740_s26, 2048  ;;  %p2533_p11 = scmp.lt.s32.totalorder %s1740_s26, %s1740_s26 }
 0x25e   :  { %3580 = vst [vmem:[#allocation20_spill] sm:$0xff] %v2966_v17  ;;  %v2241_v21 = vpop.eup %2240  ;;  %v300_v4 = vmul.f32 %v2467_v5, %v2239_v47  ;;  %p2529_p10 = scmp.ne.s32.totalorder %s1740_s26, %s2528_s27  ;;  %p2534_p12 = scmp.lt.s32.totalorder %s2528_s27, %s2528_s27 }
 0x25f   :  { %v2243_v20 = vpop.eup %2242  ;;  %v2969_v30 = vadd.f32 %v636_v14, %v299_v60  ;;  %v635_v50 = vmul.f32 %v2241_v21, %v2826_v51 }
 0x260   :  { %v2245_v39 = vpop.eup %2244  ;;  %v303_v25 = vmul.f32 %v2468_v8, %v2243_v20  ;;  %p2535_p13 = por %p2534_p12, %p2533_p11 }
 0x261   :  { %3581 = vst [vmem:[#allocation21_spill] sm:$0xff] %v2969_v30  ;;  %v2247_v22 = vpop.eup %2246  ;;  %v2972_v12 = vadd.f32 %v635_v50, %v298_v33  ;;  %v638_v13 = vmul.f32 %v2245_v39, %v2831_v27 }
 0x262   :  { %v2249_v56 = vpop.eup %2248  ;;  %v302_v53 = vmul.f32 %v2469_v0, %v2247_v22  ;;  %p2536_p0 = pnand %p2535_p13, %p2529_p10 }
 0x263   :  { %3582 = vst [vmem:[#allocation22_spill] sm:$0xff] %v2972_v12  ;;  %v2975_v44 = vadd.f32 %v638_v13, %v301_v18  ;;  %v637_v7 = vmul.f32 %v2249_v56, %v2836_v37 }
 0x264   :  { %v2251_v54 = vpop.eup %2250 }
 0x265   :  { %3583 = vst [vmem:[#allocation23_spill] sm:$0xff] %v2975_v44  ;;  %v2978_v3 = vadd.f32 %v637_v7, %v300_v4  ;;  %v640_v51 = vmul.f32 %v2251_v54, %v2841_v34 }
 0x266   :  { %v2253_v15 = vpop.eup %2252 }
 0x267   :  { %3584 = vst [vmem:[#allocation24_spill] sm:$0xff] %v2978_v3  ;;  %v2981_v31 = vadd.f32 %v640_v51, %v303_v25  ;;  %v639_v26 = vmul.f32 %v2253_v15, %v2846_v40 }
 0x269   :  { %3585 = vst [vmem:[#allocation25_spill] sm:$0xff] %v2981_v31  ;;  %v2984_v27 = vadd.f32 %v639_v26, %v302_v53 }
 0x26b   :  { %3586 = vst [vmem:[#allocation26_spill] sm:$0xff] %v2984_v27 }
 0x29c   :  { %v1971_v61 = vpop.f32.mrf.mxu1 }
 0x29d   :  { %v2987_v57 = vmul.f32 %v2754_v32, %v1971_v61 }
 0x29e   :  { %v741_v52 = vpop.f32.mrf.mxu1 }
 0x29f   :  { %v2990_v37 = vmul.f32 %v2756_v35, %v741_v52  ;;  %v837_v34 = vmul.f32 %v2995_v2, %v2987_v57 }
 0x2a0   :  { %v1974_v38 = vpop.f32.mrf.mxu1 }
 0x2a1   :  { %v3000_v40 = vmul.f32 %v2746_v29, %v1974_v38  ;;  %854 = vadd.xlane.f32.xlu1 %v837_v34  ;;  %v836_v11 = vmul.f32 %v2995_v2, %v2990_v37 }
 0x2a2   :  { %v751_v62 = vpop.f32.mrf.mxu1 }
 0x2a3   :  { %v3005_v60 = vmul.f32 %v2748_v23, %v751_v62  ;;  %852 = vadd.xlane.f32.xlu0 %v836_v11  ;;  %v839_v48 = vmul.f32 %v2995_v2, %v3000_v40 }
 0x2a4   :  { %v1977_v47 = vpop.f32.mrf.mxu1 }
 0x2a5   :  { %v3010_v6 = vmul.f32 %v2738_v63, %v1977_v47  ;;  %858 = vadd.xlane.f32.xlu1 %v839_v48  ;;  %v838_v33 = vmul.f32 %v2995_v2, %v3005_v60  ;;  %v3595_v47 = vld [vmem:[#allocation11_spill] sm:$0xff] }
 0x2a6   :  { %v761_v14 = vpop.f32.mrf.mxu1 }
 0x2a7   :  { %v3015_v21 = vmul.f32 %v2740_v19, %v761_v14  ;;  %856 = vadd.xlane.f32.xlu0 %v838_v33  ;;  %v841_v20 = vmul.f32 %v2995_v2, %v3010_v6 }
 0x2a8   :  { %v1980_v1 = vpop.f32.mrf.mxu1 }
 0x2a9   :  { %v3020_v18 = vmul.f32 %v2730_v58, %v1980_v1  ;;  %862 = vadd.xlane.f32.xlu1 %v841_v20  ;;  %v840_v50 = vmul.f32 %v2995_v2, %v3015_v21  ;;  %v3597_v1 = vld [vmem:[#allocation12_spill] sm:$0xff] }
 0x2aa   :  { %v771_v39 = vpop.f32.mrf.mxu1 }
 0x2ab   :  { %3587 = vst [vmem:[#allocation27_spill] sm:$0xff] %v3020_v18  ;;  %v3025_v22 = vmul.f32 %v2732_v59, %v771_v39  ;;  %860 = vadd.xlane.f32.xlu0 %v840_v50  ;;  %v843_v5 = vmul.f32 %v2995_v2, %v3020_v18 }
 0x2ac   :  { %v1983_v4 = vpop.f32.mrf.mxu1 }
 0x2ad   :  { %3588 = vst [vmem:[#allocation28_spill] sm:$0xff] %v3025_v22  ;;  %v3030_v13 = vmul.f32 %v2722_v42, %v1983_v4  ;;  %866 = vadd.xlane.f32.xlu1 %v843_v5  ;;  %v842_v56 = vmul.f32 %v2995_v2, %v3025_v22 }
 0x2ae   :  { %v781_v8 = vpop.f32.mrf.mxu1 }
 0x2af   :  { %3589 = vst [vmem:[#allocation29_spill] sm:$0xff] %v3030_v13  ;;  %v3035_v25 = vmul.f32 %v2724_v55, %v781_v8  ;;  %864 = vadd.xlane.f32.xlu0 %v842_v56  ;;  %v845_v7 = vmul.f32 %v2995_v2, %v3030_v13 }
 0x2b0   :  { %v1986_v54 = vpop.f32.mrf.mxu1 }
 0x2b1   :  { %3590 = vst [vmem:[#allocation30_spill] sm:$0xff] %v3035_v25  ;;  %v3040_v0 = vmul.f32 %v2714_v46, %v1986_v54  ;;  %870 = vadd.xlane.f32.xlu1 %v845_v7  ;;  %v844_v53 = vmul.f32 %v2995_v2, %v3035_v25 }
 0x2b2   :  { %v791_v51 = vpop.f32.mrf.mxu1 }
 0x2b3   :  { %3591 = vst [vmem:[#allocation31_spill] sm:$0xff] %v3040_v0  ;;  %v3045_v15 = vmul.f32 %v2716_v49, %v791_v51  ;;  %868 = vadd.xlane.f32.xlu0 %v844_v53  ;;  %v847_v26 = vmul.f32 %v2995_v2, %v3040_v0  ;;  %v1023_v54 = vmul.f32 %v2714_v46, %v3040_v0 }
 0x2b4   :  { %v1989_v61 = vpop.f32.mrf.mxu1  ;;  %v1021_v51 = vmul.f32 %v2722_v42, %v3030_v13 }
 0x2b5   :  { %3592 = vst [vmem:[#allocation32_spill] sm:$0xff] %v3045_v15  ;;  %v3050_v52 = vmul.f32 %v2704_v28, %v1989_v61  ;;  %874 = vadd.xlane.f32.xlu1 %v847_v26  ;;  %v846_v34 = vmul.f32 %v2995_v2, %v3045_v15  ;;  %v1022_v53 = vmul.f32 %v2716_v49, %v3045_v15 }
 0x2b6   :  { %v801_v38 = vpop.f32.mrf.mxu1  ;;  %v1020_v26 = vmul.f32 %v2724_v55, %v3035_v25  ;;  %v1019_v61 = vmul.f32 %v2730_v58, %v3020_v18 }
 0x2b7   :  { %3593 = vst [vmem:[#allocation33_spill] sm:$0xff] %v3050_v52  ;;  %v3055_v11 = vmul.f32 %v2708_v36, %v801_v38  ;;  %872 = vadd.xlane.f32.xlu0 %v846_v34  ;;  %v849_v62 = vmul.f32 %v2995_v2, %v3050_v52  ;;  %v1025_v8 = vmul.f32 %v2704_v28, %v3050_v52 }
 0x2b8   :  { %v1992_v48 = vpop.f32.mrf.mxu1  ;;  %v1018_v34 = vmul.f32 %v2732_v59, %v3025_v22  ;;  %v1017_v38 = vmul.f32 %v2738_v63, %v3010_v6 }
 0x2b9   :  { %3594 = vst [vmem:[#allocation34_spill] sm:$0xff] %v3055_v11  ;;  %v3060_v33 = vmul.f32 %v3595_v47, %v1992_v48  ;;  %878 = vadd.xlane.f32.xlu1 %v849_v62  ;;  %v848_v14 = vmul.f32 %v2995_v2, %v3055_v11  ;;  %v1024_v7 = vmul.f32 %v2708_v36, %v3055_v11 }
 0x2ba   :  { %v811_v20 = vpop.f32.mrf.mxu1  ;;  %v1016_v62 = vmul.f32 %v2740_v19, %v3015_v21  ;;  %v1015_v48 = vmul.f32 %v2746_v29, %v3000_v40 }
 0x2bb   :  { %3596 = vst [vmem:[#allocation11_spill] sm:$0xff] %v3060_v33  ;;  %v3065_v50 = vmul.f32 %v3597_v1, %v811_v20  ;;  %876 = vadd.xlane.f32.xlu0 %v848_v14  ;;  %v1027_v39 = vmul.f32 %v3595_v47, %v3060_v33  ;;  %v851_v5 = vmul.f32 %v2995_v2, %v3060_v33 }
 0x2bc   :  { %v1014_v14 = vmul.f32 %v2748_v23, %v3005_v60  ;;  %v1013_v20 = vmul.f32 %v2754_v32, %v2987_v57 }
 0x2bd   :  { %3598 = vst [vmem:[#allocation12_spill] sm:$0xff] %v3065_v50  ;;  %1993 = vmatprep.subr.mxu0 %v1027_v39  ;;  %882 = vadd.xlane.f32.xlu1 %v851_v5  ;;  %v1026_v4 = vmul.f32 %v3597_v1, %v3065_v50  ;;  %v850_v56 = vmul.f32 %v2995_v2, %v3065_v50  ;;  %v3103_v5 = vld [vmem:[#allocation2 + $0x8] sm:$0xff] }
 0x2be   :  { %1994 = vmatpush3.msra.mxu0 %v1027_v39  ;;  %v1012_v39 = vmul.f32 %v2756_v35, %v2990_v37 }
 0x2bf   :  { %1995 = vmatprep.subr.mxu0 %v1026_v4  ;;  %880 = vadd.xlane.f32.xlu0 %v850_v56  ;;  %v3109_v56 = vld [vmem:[#allocation2 + $0x18] sm:$0xff] }
 0x2c0   :  { %1996 = vmatpush3.msra.mxu0 %v1026_v4  ;;  %v3106_v4 = vld [vmem:[#allocation2 + $0x10] sm:$0xff] }
 0x2c1   :  { %1997 = vmatprep.subr.mxu0 %v1025_v8 }
 0x2c2   :  { %1998 = vmatpush3.msra.mxu0 %v1025_v8  ;;  %v3112_v8 = vld [vmem:[#allocation2 + $0x20] sm:$0xff] }
 0x2c3   :  { %1999 = vmatprep.subr.mxu0 %v1024_v7 }
 0x2c4   :  { %2000 = vmatpush3.msra.mxu0 %v1024_v7  ;;  %v3115_v7 = vld [vmem:[#allocation2 + $0x28] sm:$0xff] }
 0x2c5   :  { %2001 = vmatprep.subr.mxu0 %v1023_v54 }
 0x2c6   :  { %2002 = vmatpush3.msra.mxu0 %v1023_v54  ;;  %v3118_v54 = vld [vmem:[#allocation2 + $0x30] sm:$0xff] }
 0x2c7   :  { %2003 = vmatprep.subr.mxu0 %v1022_v53 }
 0x2c8   :  { %2004 = vmatpush3.msra.mxu0 %v1022_v53  ;;  %v3121_v53 = vld [vmem:[#allocation2 + $0x38] sm:$0xff] }
 0x2c9   :  { %2005 = vmatprep.subr.mxu0 %v1021_v51 }
 0x2ca   :  { %2006 = vmatpush3.msra.mxu0 %v1021_v51  ;;  %v3124_v51 = vld [vmem:[#allocation2 + $0x40] sm:$0xff] }
 0x2cb   :  { %2007 = vmatprep.subr.mxu0 %v1020_v26 }
 0x2cc   :  { %2008 = vmatpush3.msra.mxu0 %v1020_v26  ;;  %v3127_v26 = vld [vmem:[#allocation2 + $0x48] sm:$0xff] }
 0x2cd   :  { %2009 = vmatprep.subr.mxu0 %v1019_v61 }
 0x2ce   :  { %2010 = vmatpush3.msra.mxu0 %v1019_v61  ;;  %v3130_v61 = vld [vmem:[#allocation2 + $0x50] sm:$0xff] }
 0x2cf   :  { %2011 = vmatprep.subr.mxu0 %v1018_v34 }
 0x2d0   :  { %2012 = vmatpush3.msra.mxu0 %v1018_v34  ;;  %v3133_v34 = vld [vmem:[#allocation2 + $0x58] sm:$0xff] }
 0x2d1   :  { %2013 = vmatprep.subr.mxu0 %v1017_v38 }
 0x2d2   :  { %2014 = vmatpush3.msra.mxu0 %v1017_v38  ;;  %v3136_v38 = vld [vmem:[#allocation2 + $0x60] sm:$0xff] }
 0x2d3   :  { %2015 = vmatprep.subr.mxu0 %v1016_v62 }
 0x2d4   :  { %2016 = vmatpush3.msra.mxu0 %v1016_v62  ;;  %v3139_v62 = vld [vmem:[#allocation2 + $0x68] sm:$0xff] }
 0x2d5   :  { %2017 = vmatprep.subr.mxu0 %v1015_v48 }
 0x2d6   :  { %2018 = vmatpush3.msra.mxu0 %v1015_v48  ;;  %v3142_v48 = vld [vmem:[#allocation2 + $0x70] sm:$0xff] }
 0x2d7   :  { %2019 = vmatprep.subr.mxu0 %v1014_v14 }
 0x2d8   :  { %2020 = vmatpush3.msra.mxu0 %v1014_v14  ;;  %v3145_v14 = vld [vmem:[#allocation2 + $0x78] sm:$0xff] }
 0x2d9   :  { %2021 = vmatprep.subr.mxu0 %v1013_v20 }
 0x2da   :  { %2022 = vmatpush3.msra.mxu0 %v1013_v20 }
 0x2db   :  { %2023 = vmatprep.subr.mxu0 %v1012_v39 }
 0x2dc   :  { %2024 = vmatpush3.msra.mxu0 %v1012_v39 }
 0x2dd   :  { %2026 = vmatmul.mubr.f32.vlgmr.msra.gmra.mxu0 %v3103_v5 }
 0x2de   :  { %2028 = vmatprep.mubr.f32.mxu0 %v3106_v4 }
 0x2e1   :  { %2029 = vmatmul.mubr.f32.gmra.mxu0 %v3109_v56 }
 0x2e2   :  { %2031 = vmatprep.mubr.f32.mxu0 %v3112_v8 }
 0x2e5   :  { %2032 = vmatmul.mubr.f32.gmra.mxu0 %v3115_v7 }
 0x2e6   :  { %2034 = vmatprep.mubr.f32.mxu0 %v3118_v54 }
 0x2e9   :  { %2035 = vmatmul.mubr.f32.gmra.mxu0 %v3121_v53 }
 0x2ea   :  { %2037 = vmatprep.mubr.f32.mxu0 %v3124_v51 }
 0x2ed   :  { %2038 = vmatmul.mubr.f32.gmra.mxu0 %v3127_v26 }
 0x2ee   :  { %2040 = vmatprep.mubr.f32.mxu0 %v3130_v61 }
 0x2f1   :  { %2041 = vmatmul.mubr.f32.gmra.mxu0 %v3133_v34 }
 0x2f2   :  { %2043 = vmatprep.mubr.f32.mxu0 %v3136_v38 }
 0x2f5   :  { %2044 = vmatmul.mubr.f32.gmra.mxu0 %v3139_v62 }
 0x2f6   :  { %2046 = vmatprep.mubr.f32.mxu0 %v3142_v48 }
 0x2f9   :  { %2047 = vmatmul.mubr.f32.gmra.mxu0 %v3145_v14 }
 0x39d   :  { %v2027_v20 = vpop.f32.mrf.mxu0 }
 0x39e   :  { %v3149_v39 = vmul.f32 %v2754_v32, %v2027_v20 }
 0x39f   :  { %v1094_v50 = vpop.f32.mrf.mxu0 }
 0x3a0   :  { %v3152_v27 = vmul.f32 %v2756_v35, %v1094_v50  ;;  %v1190_v33 = vmul.f32 %v2995_v2, %v3149_v39 }
 0x3a1   :  { %v2030_v31 = vpop.f32.mrf.mxu0 }
 0x3a2   :  { %v3157_v11 = vmul.f32 %v2746_v29, %v2030_v31  ;;  %1207 = vadd.xlane.f32.xlu1 %v1190_v33  ;;  %v1189_v3 = vmul.f32 %v2995_v2, %v3152_v27 }
 0x3a3   :  { %v1104_v52 = vpop.f32.mrf.mxu0 }
 0x3a4   :  { %v3162_v44 = vmul.f32 %v2748_v23, %v1104_v52  ;;  %1205 = vadd.xlane.f32.xlu0 %v1189_v3  ;;  %v1192_v50 = vmul.f32 %v2995_v2, %v3157_v11 }
 0x3a5   :  { %v2033_v20 = vpop.f32.mrf.mxu0 }
 0x3a6   :  { %v3167_v15 = vmul.f32 %v2738_v63, %v2033_v20  ;;  %1211 = vadd.xlane.f32.xlu1 %v1192_v50  ;;  %v1191_v31 = vmul.f32 %v2995_v2, %v3162_v44 }
 0x3a7   :  { %v1114_v33 = vpop.f32.mrf.mxu0 }
 0x3a8   :  { %v3172_v12 = vmul.f32 %v2740_v19, %v1114_v33  ;;  %1209 = vadd.xlane.f32.xlu0 %v1191_v31  ;;  %v1194_v52 = vmul.f32 %v2995_v2, %v3167_v15 }
 0x3a9   :  { %v2036_v3 = vpop.f32.mrf.mxu0 }
 0x3aa   :  { %v3177_v30 = vmul.f32 %v2730_v58, %v2036_v3  ;;  %1215 = vadd.xlane.f32.xlu1 %v1194_v52  ;;  %v1193_v20 = vmul.f32 %v2995_v2, %v3172_v12 }
 0x3ab   :  { %v1124_v50 = vpop.f32.mrf.mxu0 }
 0x3ac   :  { %v3182_v0 = vmul.f32 %v2732_v59, %v1124_v50  ;;  %1213 = vadd.xlane.f32.xlu0 %v1193_v20  ;;  %v1196_v33 = vmul.f32 %v2995_v2, %v3177_v30 }
 0x3ad   :  { %v2039_v31 = vpop.f32.mrf.mxu0 }
 0x3ae   :  { %v3187_v25 = vmul.f32 %v2722_v42, %v2039_v31  ;;  %1219 = vadd.xlane.f32.xlu1 %v1196_v33  ;;  %v1195_v3 = vmul.f32 %v2995_v2, %v3182_v0 }
 0x3af   :  { %v1134_v52 = vpop.f32.mrf.mxu0 }
 0x3b0   :  { %v3192_v13 = vmul.f32 %v2724_v55, %v1134_v52  ;;  %1217 = vadd.xlane.f32.xlu0 %v1195_v3  ;;  %v1198_v50 = vmul.f32 %v2995_v2, %v3187_v25 }
 0x3b1   :  { %v2042_v20 = vpop.f32.mrf.mxu0 }
 0x3b2   :  { %3599 = vst [vmem:[#allocation35_spill] sm:$0xff] %v3192_v13  ;;  %v3197_v17 = vmul.f32 %v2714_v46, %v2042_v20  ;;  %1223 = vadd.xlane.f32.xlu1 %v1198_v50  ;;  %v1197_v31 = vmul.f32 %v2995_v2, %v3192_v13 }
 0x3b3   :  { %v1144_v33 = vpop.f32.mrf.mxu0 }
 0x3b4   :  { %3600 = vst [vmem:[#allocation36_spill] sm:$0xff] %v3197_v17  ;;  %v3202_v16 = vmul.f32 %v2716_v49, %v1144_v33  ;;  %1221 = vadd.xlane.f32.xlu0 %v1197_v31  ;;  %v1200_v52 = vmul.f32 %v2995_v2, %v3197_v17 }
 0x3b5   :  { %v2045_v3 = vpop.f32.mrf.mxu0 }
 0x3b6   :  { %3601 = vst [vmem:[#allocation37_spill] sm:$0xff] %v3202_v16  ;;  %v3207_v22 = vmul.f32 %v2704_v28, %v2045_v3  ;;  %1227 = vadd.xlane.f32.xlu1 %v1200_v52  ;;  %v1199_v20 = vmul.f32 %v2995_v2, %v3202_v16 }
 0x3b7   :  { %v1154_v50 = vpop.f32.mrf.mxu0 }
 0x3b8   :  { %3602 = vst [vmem:[#allocation38_spill] sm:$0xff] %v3207_v22  ;;  %v3212_v18 = vmul.f32 %v2708_v36, %v1154_v50  ;;  %1225 = vadd.xlane.f32.xlu0 %v1199_v20  ;;  %v1202_v33 = vmul.f32 %v2995_v2, %v3207_v22 }
 0x3b9   :  { %v2048_v31 = vpop.f32.mrf.mxu0 }
 0x3ba   :  { %3603 = vst [vmem:[#allocation39_spill] sm:$0xff] %v3212_v18  ;;  %v3217_v9 = vmul.f32 %v3595_v47, %v2048_v31  ;;  %1231 = vadd.xlane.f32.xlu1 %v1202_v33  ;;  %v1201_v3 = vmul.f32 %v2995_v2, %v3212_v18 }
 0x3bb   :  { %v1164_v52 = vpop.f32.mrf.mxu0 }
 0x3bc   :  { %3604 = vst [vmem:[#allocation40_spill] sm:$0xff] %v3217_v9  ;;  %v3222_v45 = vmul.f32 %v3597_v1, %v1164_v52  ;;  %1229 = vadd.xlane.f32.xlu0 %v1201_v3  ;;  %v1380_v50 = vmul.f32 %v3595_v47, %v3217_v9  ;;  %v1204_v20 = vmul.f32 %v2995_v2, %v3217_v9 }
 0x3bd   :  { %v1378_v3 = vmul.f32 %v2704_v28, %v3207_v22  ;;  %v1377_v52 = vmul.f32 %v2708_v36, %v3212_v18 }
 0x3be   :  { %3605 = vst [vmem:[#allocation41_spill] sm:$0xff] %v3222_v45  ;;  %2049 = vmatprep.subr.mxu1 %v1380_v50  ;;  %1235 = vadd.xlane.f32.xlu1 %v1204_v20  ;;  %v1379_v31 = vmul.f32 %v3597_v1, %v3222_v45  ;;  %v1203_v33 = vmul.f32 %v2995_v2, %v3222_v45 }
 0x3bf   :  { %2050 = vmatpush3.msra.mxu1 %v1380_v50  ;;  %v1376_v20 = vmul.f32 %v2714_v46, %v3197_v17  ;;  %v1375_v50 = vmul.f32 %v2716_v49, %v3202_v16 }
 0x3c0   :  { %2051 = vmatprep.subr.mxu1 %v1379_v31  ;;  %1233 = vadd.xlane.f32.xlu0 %v1203_v33  ;;  %v1374_v33 = vmul.f32 %v2722_v42, %v3187_v25 }
 0x3c1   :  { %2052 = vmatpush3.msra.mxu1 %v1379_v31  ;;  %v1373_v31 = vmul.f32 %v2724_v55, %v3192_v13 }
 0x3c2   :  { %2053 = vmatprep.subr.mxu1 %v1378_v3 }
 0x3c3   :  { %2054 = vmatpush3.msra.mxu1 %v1378_v3  ;;  %v1372_v3 = vmul.f32 %v2730_v58, %v3177_v30 }
 0x3c4   :  { %2055 = vmatprep.subr.mxu1 %v1377_v52 }
 0x3c5   :  { %2056 = vmatpush3.msra.mxu1 %v1377_v52  ;;  %v1371_v52 = vmul.f32 %v2732_v59, %v3182_v0 }
 0x3c6   :  { %2057 = vmatprep.subr.mxu1 %v1376_v20 }
 0x3c7   :  { %2058 = vmatpush3.msra.mxu1 %v1376_v20  ;;  %v1370_v20 = vmul.f32 %v2738_v63, %v3167_v15 }
 0x3c8   :  { %2059 = vmatprep.subr.mxu1 %v1375_v50 }
 0x3c9   :  { %2060 = vmatpush3.msra.mxu1 %v1375_v50  ;;  %v1369_v50 = vmul.f32 %v2740_v19, %v3172_v12 }
 0x3ca   :  { %2061 = vmatprep.subr.mxu1 %v1374_v33 }
 0x3cb   :  { %2062 = vmatpush3.msra.mxu1 %v1374_v33  ;;  %v1368_v33 = vmul.f32 %v2746_v29, %v3157_v11 }
 0x3cc   :  { %2063 = vmatprep.subr.mxu1 %v1373_v31 }
 0x3cd   :  { %2064 = vmatpush3.msra.mxu1 %v1373_v31  ;;  %v1367_v31 = vmul.f32 %v2748_v23, %v3162_v44 }
 0x3ce   :  { %2065 = vmatprep.subr.mxu1 %v1372_v3 }
 0x3cf   :  { %2066 = vmatpush3.msra.mxu1 %v1372_v3  ;;  %v1366_v3 = vmul.f32 %v2754_v32, %v3149_v39 }
 0x3d0   :  { %2067 = vmatprep.subr.mxu1 %v1371_v52 }
 0x3d1   :  { %2068 = vmatpush3.msra.mxu1 %v1371_v52  ;;  %v1365_v52 = vmul.f32 %v2756_v35, %v3152_v27 }
 0x3d2   :  { %2069 = vmatprep.subr.mxu1 %v1370_v20 }
 0x3d3   :  { %2070 = vmatpush3.msra.mxu1 %v1370_v20 }
 0x3d4   :  { %2071 = vmatprep.subr.mxu1 %v1369_v50 }
 0x3d5   :  { %2072 = vmatpush3.msra.mxu1 %v1369_v50 }
 0x3d6   :  { %2073 = vmatprep.subr.mxu1 %v1368_v33 }
 0x3d7   :  { %2074 = vmatpush3.msra.mxu1 %v1368_v33 }
 0x3d8   :  { %2075 = vmatprep.subr.mxu1 %v1367_v31 }
 0x3d9   :  { %2076 = vmatpush3.msra.mxu1 %v1367_v31 }
 0x3da   :  { %2077 = vmatprep.subr.mxu1 %v1366_v3 }
 0x3db   :  { %2078 = vmatpush3.msra.mxu1 %v1366_v3 }
 0x3dc   :  { %2079 = vmatprep.subr.mxu1 %v1365_v52 }
 0x3dd   :  { %2080 = vmatpush3.msra.mxu1 %v1365_v52 }
 0x3de   :  { %2082 = vmatmul.mubr.f32.vlgmr.msra.gmra.mxu1 %v3103_v5 }
 0x3df   :  { %2084 = vmatprep.mubr.f32.mxu1 %v3106_v4 }
 0x3e2   :  { %2085 = vmatmul.mubr.f32.gmra.mxu1 %v3109_v56 }
 0x3e3   :  { %2087 = vmatprep.mubr.f32.mxu1 %v3112_v8 }
 0x3e6   :  { %2088 = vmatmul.mubr.f32.gmra.mxu1 %v3115_v7 }
 0x3e7   :  { %2090 = vmatprep.mubr.f32.mxu1 %v3118_v54 }
 0x3ea   :  { %2091 = vmatmul.mubr.f32.gmra.mxu1 %v3121_v53 }
 0x3eb   :  { %2093 = vmatprep.mubr.f32.mxu1 %v3124_v51 }
 0x3ee   :  { %2094 = vmatmul.mubr.f32.gmra.mxu1 %v3127_v26 }
 0x3ef   :  { %2096 = vmatprep.mubr.f32.mxu1 %v3130_v61 }
 0x3f2   :  { %2097 = vmatmul.mubr.f32.gmra.mxu1 %v3133_v34 }
 0x3f3   :  { %2099 = vmatprep.mubr.f32.mxu1 %v3136_v38 }
 0x3f6   :  { %2100 = vmatmul.mubr.f32.gmra.mxu1 %v3139_v62 }
 0x3f7   :  { %2102 = vmatprep.mubr.f32.mxu1 %v3142_v48 }
 0x3fa   :  { %2103 = vmatmul.mubr.f32.gmra.mxu1 %v3145_v14 }
 0x49e   :  { %v2083_v5 = vpop.f32.mrf.mxu1 }
 0x49f   :  { %v3276_v4 = vmul.f32 %v2754_v32, %v2083_v5 }
 0x4a0   :  { %v1447_v56 = vpop.f32.mrf.mxu1 }
 0x4a1   :  { %v3279_v8 = vmul.f32 %v2756_v35, %v1447_v56  ;;  %v1543_v7 = vmul.f32 %v2995_v2, %v3276_v4 }
 0x4a2   :  { %v2086_v54 = vpop.f32.mrf.mxu1 }
 0x4a3   :  { %v3284_v53 = vmul.f32 %v2746_v29, %v2086_v54  ;;  %1560 = vadd.xlane.f32.xlu1 %v1543_v7  ;;  %v1542_v51 = vmul.f32 %v2995_v2, %v3279_v8 }
 0x4a4   :  { %v1457_v26 = vpop.f32.mrf.mxu1 }
 0x4a5   :  { %v3289_v61 = vmul.f32 %v2748_v23, %v1457_v26  ;;  %1558 = vadd.xlane.f32.xlu0 %v1542_v51  ;;  %v1545_v32 = vmul.f32 %v2995_v2, %v3284_v53 }
 0x4a6   :  { %v2089_v35 = vpop.f32.mrf.mxu1 }
 0x4a7   :  { %v3294_v34 = vmul.f32 %v2738_v63, %v2089_v35  ;;  %1564 = vadd.xlane.f32.xlu1 %v1545_v32  ;;  %v1544_v29 = vmul.f32 %v2995_v2, %v3289_v61 }
 0x4a8   :  { %v1467_v38 = vpop.f32.mrf.mxu1 }
 0x4a9   :  { %v3299_v62 = vmul.f32 %v2740_v19, %v1467_v38  ;;  %1562 = vadd.xlane.f32.xlu0 %v1544_v29  ;;  %v1547_v23 = vmul.f32 %v2995_v2, %v3294_v34 }
 0x4aa   :  { %v2092_v48 = vpop.f32.mrf.mxu1 }
 0x4ab   :  { %v3304_v14 = vmul.f32 %v2730_v58, %v2092_v48  ;;  %1568 = vadd.xlane.f32.xlu1 %v1547_v23  ;;  %v1546_v63 = vmul.f32 %v2995_v2, %v3299_v62 }
 0x4ac   :  { %v1477_v20 = vpop.f32.mrf.mxu1 }
 0x4ad   :  { %v3309_v50 = vmul.f32 %v2732_v59, %v1477_v20  ;;  %1566 = vadd.xlane.f32.xlu0 %v1546_v63  ;;  %v1549_v19 = vmul.f32 %v2995_v2, %v3304_v14  ;;  %v530_v20 = vpop.xlane.xlu1 %529 }
 0x4ae   :  { %v2095_v33 = vpop.f32.mrf.mxu1 }
 0x4af   :  { %3606 = vst [vmem:[#allocation42_spill] sm:$0xff] %v3309_v50  ;;  %v3314_v31 = vmul.f32 %v2722_v42, %v2095_v33  ;;  %1572 = vadd.xlane.f32.xlu1 %v1549_v19  ;;  %v1548_v58 = vmul.f32 %v2995_v2, %v3309_v50 }
 0x4b0   :  { %v1487_v3 = vpop.f32.mrf.mxu1 }
 0x4b1   :  { %3607 = vst [vmem:[#allocation43_spill] sm:$0xff] %v3314_v31  ;;  %v3319_v52 = vmul.f32 %v2724_v55, %v1487_v3  ;;  %1570 = vadd.xlane.f32.xlu0 %v1548_v58  ;;  %v1551_v59 = vmul.f32 %v2995_v2, %v3314_v31  ;;  %v855_v19 = vpop.xlane.xlu1 %854 }
 0x4b2   :  { %v2098_v5 = vpop.f32.mrf.mxu1 }
 0x4b3   :  { %3608 = vst [vmem:[#allocation44_spill] sm:$0xff] %v3319_v52  ;;  %v3324_v56 = vmul.f32 %v2714_v46, %v2098_v5  ;;  %1576 = vadd.xlane.f32.xlu1 %v1551_v59  ;;  %v1550_v42 = vmul.f32 %v2995_v2, %v3319_v52 }
 0x4b4   :  { %v1497_v7 = vpop.f32.mrf.mxu1 }
 0x4b5   :  { %3609 = vst [vmem:[#allocation45_spill] sm:$0xff] %v3324_v56  ;;  %v3329_v54 = vmul.f32 %v2716_v49, %v1497_v7  ;;  %1574 = vadd.xlane.f32.xlu0 %v1550_v42  ;;  %v1553_v55 = vmul.f32 %v2995_v2, %v3324_v56  ;;  %v859_v58 = vpop.xlane.xlu1 %858  ;;  %v3615_v42 = vld [vmem:[#allocation15_spill] sm:$0xff] }
 0x4b6   :  { %v2101_v51 = vpop.f32.mrf.mxu1 }
 0x4b7   :  { %3610 = vst [vmem:[#allocation46_spill] sm:$0xff] %v3329_v54  ;;  %v3334_v26 = vmul.f32 %v2704_v28, %v2101_v51  ;;  %1580 = vadd.xlane.f32.xlu1 %v1553_v55  ;;  %v1552_v46 = vmul.f32 %v2995_v2, %v3329_v54  ;;  %v3616_v55 = vld [vmem:[#allocation16_spill] sm:$0xff] }
 0x4b8   :  { %v1507_v32 = vpop.f32.mrf.mxu1  ;;  %v208_v51 = vsub.f32 0.0, %v3616_v55 }
 0x4b9   :  { %3611 = vst [vmem:[#allocation47_spill] sm:$0xff] %v3334_v26  ;;  %v3339_v35 = vmul.f32 %v2708_v36, %v1507_v32  ;;  %1578 = vadd.xlane.f32.xlu0 %v1552_v46  ;;  %v1555_v49 = vmul.f32 %v2995_v2, %v3334_v26  ;;  %v863_v59 = vpop.xlane.xlu1 %862  ;;  %v887_v26 = vsub.f32 0.0, %v859_v58 }
 0x4ba   :  { %v2104_v29 = vpop.f32.mrf.mxu1 }
 0x4bb   :  { %3612 = vst [vmem:[#allocation48_spill] sm:$0xff] %v3339_v35  ;;  %v3344_v38 = vmul.f32 %v3595_v47, %v2104_v29  ;;  %1584 = vadd.xlane.f32.xlu1 %v1555_v49  ;;  %v1554_v28 = vmul.f32 %v2995_v2, %v3339_v35  ;;  %v528_v47 = vpop.xlane.xlu0 %527  ;;  %v546_v49 = vsub.f32 0.0, %v530_v20  ;;  %v238_v29 = vmul.f32 1.442695, %v208_v51 }
 0x4bc   :  { %v1517_v23 = vpop.f32.mrf.mxu1  ;;  %v906_v20 = vmul.f32 1.442695, %v887_v26 }
 0x4bd   :  { %3613 = vst [vmem:[#allocation49_spill] sm:$0xff] %v3344_v38  ;;  %v3349_v48 = vmul.f32 %v3597_v1, %v1517_v23  ;;  %1582 = vadd.xlane.f32.xlu0 %v1554_v28  ;;  %v1557_v36 = vmul.f32 %v2995_v2, %v3344_v38  ;;  %v209_v1 = vsub.f32 0.0, %v3615_v42  ;;  %v867_v7 = vpop.xlane.xlu1 %866  ;;  %v545_v28 = vsub.f32 0.0, %v528_v47 }
 0x4be   :  { %v577_v23 = vmul.f32 1.442695, %v546_v49  ;;  %v889_v49 = vsub.f32 0.0, %v863_v59 }
 0x4bf   :  { %3614 = vst [vmem:[#allocation50_spill] sm:$0xff] %v3349_v48  ;;  %1588 = vadd.xlane.f32.xlu1 %v1557_v36  ;;  %v1556_v63 = vmul.f32 %v2995_v2, %v3349_v48  ;;  %v853_v33 = vpop.xlane.xlu0 %852  ;;  %v240_v32 = vmul.f32 1.442695, %v209_v1  ;;  %v885_v36 = vsub.f32 0.0, %v855_v19  ;;  %v575_v48 = vmul.f32 1.442695, %v545_v28 }
 0x4c0   :  { %v884_v38 = vsub.f32 0.0, %v853_v33  ;;  %v910_v9 = vmul.f32 1.442695, %v889_v49 }
 0x4c1   :  { %1586 = vadd.xlane.f32.xlu0 %v1556_v63  ;;  %v871_v2 = vpop.xlane.xlu1 %870  ;;  %2254 = vpow2.f32 %v240_v32  ;;  %v902_v35 = vmul.f32 1.442695, %v885_v36 }
 0x4c2   :  { %2256 = vpow2.f32 %v238_v29  ;;  %v900_v42 = vmul.f32 1.442695, %v884_v38 }
 0x4c3   :  { %v857_v3 = vpop.xlane.xlu0 %856  ;;  %2258 = vpow2.f32 %v577_v23 }
 0x4c4   :  { %2260 = vpow2.f32 %v575_v48  ;;  %v886_v1 = vsub.f32 0.0, %v857_v3  ;;  %v891_v48 = vsub.f32 0.0, %v867_v7 }
 0x4c5   :  { %v875_v45 = vpop.xlane.xlu1 %874  ;;  %2262 = vpow2.f32 %v902_v35 }
 0x4c6   :  { %2264 = vpow2.f32 %v900_v42  ;;  %v904_v19 = vmul.f32 1.442695, %v886_v1  ;;  %v914_v59 = vmul.f32 1.442695, %v891_v48 }
 0x4c7   :  { %v861_v5 = vpop.xlane.xlu0 %860  ;;  %2266 = vpow2.f32 %v906_v20  ;;  %v893_v20 = vsub.f32 0.0, %v871_v2 }
 0x4c8   :  { %v888_v28 = vsub.f32 0.0, %v861_v5  ;;  %2268 = vpow2.f32 %v904_v19 }
 0x4c9   :  { %v879_v47 = vpop.xlane.xlu1 %878 }
 0x4ca   :  { %v908_v42 = vmul.f32 1.442695, %v888_v28  ;;  %v918_v28 = vmul.f32 1.442695, %v893_v20  ;;  %v897_v2 = vsub.f32 0.0, %v879_v47 }
 0x4cb   :  { %v865_v46 = vpop.xlane.xlu0 %864 }
 0x4cc   :  { %v890_v26 = vsub.f32 0.0, %v865_v46 }
 0x4cd   :  { %v883_v23 = vpop.xlane.xlu1 %882 }
 0x4ce   :  { %v2255_v32 = vpop.eup %2254  ;;  %v912_v49 = vmul.f32 1.442695, %v890_v26  ;;  %v926_v26 = vmul.f32 1.442695, %v897_v2 }
 0x4cf   :  { %v869_v63 = vpop.xlane.xlu0 %868  ;;  %v2257_v29 = vpop.eup %2256  ;;  %v257_v33 = vadd.f32 1.0, %v2255_v32 }
 0x4d0   :  { %v2259_v36 = vpop.eup %2258  ;;  %v256_v38 = vadd.f32 1.0, %v2257_v29  ;;  %v892_v7 = vsub.f32 0.0, %v869_v63  ;;  %v895_v29 = vsub.f32 0.0, %v875_v45  ;;  %v899_v63 = vsub.f32 0.0, %v883_v23 }
 0x4d1   :  { %v2261_v35 = vpop.eup %2260  ;;  %2270 = vrcp.f32 %v257_v33  ;;  %v594_v3 = vadd.f32 1.0, %v2259_v36  ;;  %v1208_v54 = vpop.xlane.xlu1 %1207 }
 0x4d2   :  { %v2263_v18 = vpop.eup %2262  ;;  %2272 = vpow2.f32 %v910_v9  ;;  %v593_v5 = vadd.f32 1.0, %v2261_v35  ;;  %v916_v9 = vmul.f32 1.442695, %v892_v7  ;;  %v922_v48 = vmul.f32 1.442695, %v895_v29 }
 0x4d3   :  { %v873_v55 = vpop.xlane.xlu0 %872  ;;  %2274 = vrcp.f32 %v256_v38  ;;  %v2265_v32 = vpop.eup %2264  ;;  %v933_v19 = vadd.f32 1.0, %v2263_v18  ;;  %v930_v47 = vmul.f32 1.442695, %v899_v63 }
 0x4d4   :  { %2276 = vpow2.f32 %v908_v42  ;;  %v894_v46 = vsub.f32 0.0, %v873_v55  ;;  %v932_v33 = vadd.f32 1.0, %v2265_v32  ;;  %v2267_v56 = vpop.eup %2266 }
 0x4d5   :  { %2278 = vrcp.f32 %v594_v3  ;;  %v1212_v36 = vpop.xlane.xlu1 %1211  ;;  %v935_v18 = vadd.f32 1.0, %v2267_v56  ;;  %v2269_v45 = vpop.eup %2268 }
 0x4d6   :  { %2280 = vpow2.f32 %v914_v59  ;;  %v920_v42 = vmul.f32 1.442695, %v894_v46  ;;  %v1238_v59 = vsub.f32 0.0, %v1208_v54  ;;  %v1240_v29 = vsub.f32 0.0, %v1212_v36 }
 0x4d7   :  { %v877_v51 = vpop.xlane.xlu0 %876  ;;  %2282 = vrcp.f32 %v593_v5 }
 0x4d8   :  { %2284 = vpow2.f32 %v912_v49  ;;  %v896_v38 = vsub.f32 0.0, %v877_v51  ;;  %v934_v51 = vadd.f32 1.0, %v2269_v45 }
 0x4d9   :  { %2286 = vrcp.f32 %v933_v19  ;;  %v1216_v20 = vpop.xlane.xlu1 %1215 }
 0x4da   :  { %2288 = vpow2.f32 %v918_v28  ;;  %v924_v3 = vmul.f32 1.442695, %v896_v38  ;;  %v1242_v63 = vsub.f32 0.0, %v1216_v20 }
 0x4db   :  { %v881_v58 = vpop.xlane.xlu0 %880  ;;  %2290 = vrcp.f32 %v932_v33 }
 0x4dc   :  { %2292 = vpow2.f32 %v916_v9  ;;  %v898_v55 = vsub.f32 0.0, %v881_v58  ;;  %v1255_v58 = vmul.f32 1.442695, %v1238_v59 }
 0x4dd   :  { %2294 = vpow2.f32 %v922_v48  ;;  %v1220_v2 = vpop.xlane.xlu1 %1219 }
 0x4de   :  { %v3357_v5 = vpop.eup %2270  ;;  %2296 = vpow2.f32 %v920_v42  ;;  %v928_v56 = vmul.f32 1.442695, %v898_v55  ;;  %v1259_v42 = vmul.f32 1.442695, %v1240_v29 }
 0x4df   :  { %v1206_v1 = vpop.xlane.xlu0 %1205  ;;  %3617 = vst [vmem:[#allocation15_spill] sm:$0xff] %v3357_v5  ;;  %v2273_v32 = vpop.eup %2272  ;;  %2298 = vrcp.f32 %v935_v18 }
 0x4e0   :  { %v1237_v49 = vsub.f32 0.0, %v1206_v1  ;;  %v3359_v23 = vpop.eup %2274  ;;  %2300 = vpow2.f32 %v926_v26  ;;  %v937_v54 = vadd.f32 1.0, %v2273_v32  ;;  %v1263_v32 = vmul.f32 1.442695, %v1242_v63 }
 0x4e1   :  { %3618 = vst [vmem:[#allocation16_spill] sm:$0xff] %v3359_v23  ;;  %v2277_v19 = vpop.eup %2276  ;;  %2302 = vpow2.f32 %v924_v3 }
 0x4e2   :  { %v3361_v28 = vpop.eup %2278  ;;  %2304 = vpow2.f32 %v930_v47  ;;  %v1253_v33 = vmul.f32 1.442695, %v1237_v49  ;;  %v936_v1 = vadd.f32 1.0, %v2277_v19 }
 0x4e3   :  { %v1210_v35 = vpop.xlane.xlu0 %1209  ;;  %3619 = vst [vmem:[#allocation51_spill] sm:$0xff] %v3361_v28  ;;  %v2281_v46 = vpop.eup %2280  ;;  %2306 = vrcp.f32 %v934_v51 }
 0x4e4   :  { %v1239_v9 = vsub.f32 0.0, %v1210_v35  ;;  %v3363_v48 = vpop.eup %2282  ;;  %2308 = vpow2.f32 %v928_v56  ;;  %v939_v36 = vadd.f32 1.0, %v2281_v46  ;;  %v1224_v51 = vpop.xlane.xlu1 %1223 }
 0x4e5   :  { %3620 = vst [vmem:[#allocation52_spill] sm:$0xff] %v3363_v48  ;;  %v2285_v38 = vpop.eup %2284  ;;  %2310 = vpow2.f32 %v1255_v58  ;;  %v1244_v58 = vsub.f32 0.0, %v1220_v2 }
 0x4e6   :  { %v3365_v45 = vpop.eup %2286  ;;  %2312 = vrcp.f32 %v937_v54  ;;  %v1257_v55 = vmul.f32 1.442695, %v1239_v9  ;;  %v938_v35 = vadd.f32 1.0, %v2285_v38 }
 0x4e7   :  { %v1214_v7 = vpop.xlane.xlu0 %1213  ;;  %v2289_v26 = vpop.eup %2288  ;;  %2314 = vpow2.f32 %v1253_v33 }
 0x4e8   :  { %v1241_v3 = vsub.f32 0.0, %v1214_v7  ;;  %v3367_v59 = vpop.eup %2290  ;;  %2316 = vrcp.f32 %v936_v1  ;;  %v941_v20 = vadd.f32 1.0, %v2289_v26 }
 0x4e9   :  { %v2293_v47 = vpop.eup %2292  ;;  %2318 = vpow2.f32 %v1259_v42  ;;  %v1267_v42 = vmul.f32 1.442695, %v1244_v58 }
 0x4ea   :  { %v2295_v49 = vpop.eup %2294  ;;  %2320 = vrcp.f32 %v939_v36  ;;  %v1261_v19 = vmul.f32 1.442695, %v1241_v3  ;;  %v940_v7 = vadd.f32 1.0, %v2293_v47  ;;  %v1228_v36 = vpop.xlane.xlu1 %1227 }
 0x4eb   :  { %v1218_v18 = vpop.xlane.xlu0 %1217  ;;  %v2297_v56 = vpop.eup %2296  ;;  %2322 = vpow2.f32 %v1257_v55  ;;  %v943_v33 = vadd.f32 1.0, %v2295_v49  ;;  %v1248_v23 = vsub.f32 0.0, %v1228_v36 }
 0x4ec   :  { %v3369_v54 = vpop.eup %2298  ;;  %2324 = vrcp.f32 %v938_v35  ;;  %v942_v1 = vadd.f32 1.0, %v2297_v56  ;;  %v1243_v63 = vsub.f32 0.0, %v1218_v18 }
 0x4ed   :  { %v2301_v46 = vpop.eup %2300  ;;  %2326 = vpow2.f32 %v1263_v32  ;;  %v1246_v32 = vsub.f32 0.0, %v1224_v51 }
 0x4ee   :  { %v2303_v9 = vpop.eup %2302  ;;  %2328 = vrcp.f32 %v941_v20  ;;  %v945_v2 = vadd.f32 1.0, %v2301_v46  ;;  %v1265_v20 = vmul.f32 1.442695, %v1243_v63  ;;  %v1232_v46 = vpop.xlane.xlu1 %1231 }
 0x4ef   :  { %v1222_v29 = vpop.xlane.xlu0 %1221  ;;  %v2305_v38 = vpop.eup %2304  ;;  %2330 = vpow2.f32 %v1261_v19  ;;  %v944_v3 = vadd.f32 1.0, %v2303_v9  ;;  %v1271_v9 = vmul.f32 1.442695, %v1246_v32  ;;  %v1250_v22 = vsub.f32 0.0, %v1232_v46 }
 0x4f0   :  { %v3371_v26 = vpop.eup %2306  ;;  %2332 = vrcp.f32 %v940_v7  ;;  %v947_v49 = vadd.f32 1.0, %v2305_v38  ;;  %v1245_v19 = vsub.f32 0.0, %v1222_v29 }
 0x4f1   :  { %v2309_v55 = vpop.eup %2308  ;;  %2334 = vrcp.f32 %v943_v33 }
 0x4f2   :  { %v2311_v47 = vpop.eup %2310  ;;  %2336 = vrcp.f32 %v942_v1  ;;  %v946_v18 = vadd.f32 1.0, %v2309_v55  ;;  %v1269_v63 = vmul.f32 1.442695, %v1245_v19  ;;  %v1236_v32 = vpop.xlane.xlu1 %1235 }
 0x4f3   :  { %v1226_v35 = vpop.xlane.xlu0 %1225  ;;  %v3373_v48 = vpop.eup %2312  ;;  %2338 = vpow2.f32 %v1267_v42  ;;  %v1286_v7 = vadd.f32 1.0, %v2311_v47  ;;  %v1275_v47 = vmul.f32 1.442695, %v1248_v23 }
 0x4f4   :  { %v2315_v56 = vpop.eup %2314  ;;  %2340 = vrcp.f32 %v945_v2  ;;  %v1247_v2 = vsub.f32 0.0, %v1226_v35 }
 0x4f5   :  { %v3375_v58 = vpop.eup %2316  ;;  %2342 = vrcp.f32 %v944_v3  ;;  %v1285_v51 = vadd.f32 1.0, %v2315_v56 }
 0x4f6   :  { %v2319_v33 = vpop.eup %2318  ;;  %2344 = vrcp.f32 %v947_v49 }
 0x4f7   :  { %v3377_v1 = vpop.eup %2320  ;;  %2346 = vpow2.f32 %v1265_v20  ;;  %v1230_v38 = vpop.xlane.xlu0 %1229  ;;  %v1288_v29 = vadd.f32 1.0, %v2319_v33  ;;  %v1273_v20 = vmul.f32 1.442695, %v1247_v2  ;;  %v1279_v33 = vmul.f32 1.442695, %v1250_v22 }
 0x4f8   :  { %v2323_v42 = vpop.eup %2322  ;;  %2348 = vrcp.f32 %v946_v18  ;;  %v1249_v18 = vsub.f32 0.0, %v1230_v38 }
 0x4f9   :  { %v3379_v55 = vpop.eup %2324  ;;  %2350 = vrcp.f32 %v1286_v7  ;;  %v1287_v36 = vadd.f32 1.0, %v2323_v42 }
 0x4fa   :  { %v2327_v3 = vpop.eup %2326  ;;  %2352 = vpow2.f32 %v1271_v9  ;;  %v1277_v2 = vmul.f32 1.442695, %v1249_v18 }
 0x4fb   :  { %v3381_v49 = vpop.eup %2328  ;;  %2354 = vrcp.f32 %v1285_v51  ;;  %v1290_v35 = vadd.f32 1.0, %v2327_v3  ;;  %v1234_v19 = vpop.xlane.xlu0 %1233 }
 0x4fc   :  { %v2331_v56 = vpop.eup %2330  ;;  %2356 = vpow2.f32 %v1269_v63 }
 0x4fd   :  { %v3383_v28 = vpop.eup %2332  ;;  %2358 = vrcp.f32 %v1288_v29  ;;  %v1289_v46 = vadd.f32 1.0, %v2331_v56  ;;  %v1252_v29 = vsub.f32 0.0, %v1236_v32  ;;  %v1251_v32 = vsub.f32 0.0, %v1234_v19 }
 0x4fe   :  { %v3385_v7 = vpop.eup %2334  ;;  %2360 = vpow2.f32 %v1275_v47 }
 0x4ff   :  { %v3387_v23 = vpop.eup %2336  ;;  %2362 = vrcp.f32 %v1287_v36 }
 0x500   :  { %3621 = vst [vmem:[#allocation53_spill] sm:$0xff] %v3387_v23  ;;  %v2339_v51 = vpop.eup %2338  ;;  %2364 = vpow2.f32 %v1273_v20 }
 0x501   :  { %v3389_v63 = vpop.eup %2340  ;;  %2366 = vrcp.f32 %v1290_v35  ;;  %v1292_v36 = vadd.f32 1.0, %v2339_v51  ;;  %v1283_v35 = vmul.f32 1.442695, %v1252_v29 }
 0x502   :  { %3622 = vst [vmem:[#allocation54_spill] sm:$0xff] %v3389_v63  ;;  %v3391_v38 = vpop.eup %2342  ;;  %2368 = vpow2.f32 %v1279_v33 }
 0x503   :  { %3623 = vst [vmem:[#allocation55_spill] sm:$0xff] %v3391_v38  ;;  %v3393_v22 = vpop.eup %2344  ;;  %2370 = vrcp.f32 %v1289_v46 }
 0x504   :  { %3624 = vst [vmem:[#allocation56_spill] sm:$0xff] %v3393_v22  ;;  %v2347_v52 = vpop.eup %2346 }
 0x505   :  { %v3395_v16 = vpop.eup %2348  ;;  %v1291_v46 = vadd.f32 1.0, %v2347_v52 }
 0x506   :  { %3625 = vst [vmem:[#allocation57_spill] sm:$0xff] %v3395_v16  ;;  %v3397_v63 = vpop.eup %2350 }
 0x52c   :  { %v1561_v9 = vpop.xlane.xlu1 %1560 }
 0x52d   :  { %v1591_v42 = vsub.f32 0.0, %v1561_v9 }
 0x52e   :  { %v1559_v3 = vpop.xlane.xlu0 %1558 }
 0x52f   :  { %v1608_v5 = vmul.f32 1.442695, %v1591_v42  ;;  %v1590_v47 = vsub.f32 0.0, %v1559_v3  ;;  %v2353_v3 = vpop.eup %2352 }
 0x530   :  { %v1565_v56 = vpop.xlane.xlu1 %1564  ;;  %v3399_v22 = vpop.eup %2354 }
 0x531   :  { %2372 = vpow2.f32 %v1608_v5  ;;  %v1606_v20 = vmul.f32 1.442695, %v1590_v47  ;;  %v1593_v9 = vsub.f32 0.0, %v1565_v56  ;;  %v2357_v56 = vpop.eup %2356 }
 0x532   :  { %2374 = vpow2.f32 %v1277_v2  ;;  %v1563_v18 = vpop.xlane.xlu0 %1562  ;;  %v1281_v2 = vmul.f32 1.442695, %v1251_v32  ;;  %v3401_v19 = vpop.eup %2358 }
 0x533   :  { %2376 = vpow2.f32 %v1606_v20  ;;  %v1612_v33 = vmul.f32 1.442695, %v1593_v9  ;;  %v1592_v42 = vsub.f32 0.0, %v1563_v18  ;;  %v2361_v9 = vpop.eup %2360  ;;  %v1294_v18 = vadd.f32 1.0, %v2353_v3 }
 0x534   :  { %2378 = vrcp.f32 %v1292_v36  ;;  %v1569_v51 = vpop.xlane.xlu1 %1568  ;;  %v3403_v52 = vpop.eup %2362  ;;  %v1296_v3 = vadd.f32 1.0, %v2361_v9 }
 0x535   :  { %2380 = vpow2.f32 %v1612_v33  ;;  %v1610_v5 = vmul.f32 1.442695, %v1592_v42  ;;  %v1595_v47 = vsub.f32 0.0, %v1569_v51  ;;  %v3405_v42 = vpop.eup %2364  ;;  %v1293_v51 = vadd.f32 1.0, %v2357_v56 }
 0x536   :  { %2382 = vpow2.f32 %v1283_v35  ;;  %v1567_v29 = vpop.xlane.xlu0 %1566  ;;  %v3407_v32 = vpop.eup %2366 }
 0x537   :  { %2384 = vpow2.f32 %v1610_v5  ;;  %v1616_v16 = vmul.f32 1.442695, %v1595_v47  ;;  %v1594_v20 = vsub.f32 0.0, %v1567_v29  ;;  %v3409_v29 = vpop.eup %2368 }
 0x538   :  { %2386 = vrcp.f32 %v1291_v46  ;;  %v1573_v36 = vpop.xlane.xlu1 %1572  ;;  %v3411_v31 = vpop.eup %2370 }
 0x539   :  { %2388 = vpow2.f32 %v1616_v16  ;;  %v1614_v38 = vmul.f32 1.442695, %v1594_v20  ;;  %v1597_v33 = vsub.f32 0.0, %v1573_v36 }
 0x53a   :  { %2390 = vpow2.f32 %v1281_v2  ;;  %v1571_v35 = vpop.xlane.xlu0 %1570 }
 0x53b   :  { %2392 = vpow2.f32 %v1614_v38  ;;  %v1620_v5 = vmul.f32 1.442695, %v1597_v33  ;;  %v1596_v47 = vsub.f32 0.0, %v1571_v35 }
 0x53c   :  { %2394 = vrcp.f32 %v1294_v18  ;;  %v1577_v46 = vpop.xlane.xlu1 %1576 }
 0x53d   :  { %2396 = vpow2.f32 %v1620_v5  ;;  %v1618_v16 = vmul.f32 1.442695, %v1596_v47  ;;  %v1599_v20 = vsub.f32 0.0, %v1577_v46 }
 0x53e   :  { %v2373_v36 = vpop.eup %2372  ;;  %2398 = vrcp.f32 %v1293_v51  ;;  %v1575_v56 = vpop.xlane.xlu0 %1574  ;;  %v981_v51 = vmul.f32 %v3365_v45, %v2987_v57 }
 0x53f   :  { %v3413_v2 = vpop.eup %2374  ;;  %v1639_v17 = vadd.f32 1.0, %v2373_v36  ;;  %2400 = vpow2.f32 %v1618_v16  ;;  %v1624_v38 = vmul.f32 1.442695, %v1599_v20  ;;  %v1598_v33 = vsub.f32 0.0, %v1575_v56 }
 0x540   :  { %v2377_v35 = vpop.eup %2376  ;;  %2402 = vrcp.f32 %v1296_v3  ;;  %v1581_v23 = vpop.xlane.xlu1 %1580  ;;  %v980_v56 = vmul.f32 %v3367_v59, %v2990_v37 }
 0x541   :  { %v3415_v18 = vpop.eup %2378  ;;  %2404 = vrcp.f32 %v1639_v17  ;;  %v1638_v9 = vadd.f32 1.0, %v2377_v35  ;;  %v1622_v13 = vmul.f32 1.442695, %v1598_v33  ;;  %v1601_v5 = vsub.f32 0.0, %v1581_v23 }
 0x542   :  { %v2381_v47 = vpop.eup %2380  ;;  %2406 = vpow2.f32 %v1624_v38  ;;  %v1579_v46 = vpop.xlane.xlu0 %1578  ;;  %v997_v38 = vadd.f32 %v981_v51, %v2939_v43  ;;  %v985_v43 = vmul.f32 %v3373_v48, %v3010_v6 }
 0x543   :  { %v3419_v50 = vpop.eup %2382  ;;  %2408 = vrcp.f32 %v1638_v9  ;;  %v1641_v16 = vadd.f32 1.0, %v2381_v47  ;;  %v1628_v20 = vmul.f32 1.442695, %v1601_v5  ;;  %v1600_v36 = vsub.f32 0.0, %v1579_v46 }
 0x544   :  { %v2385_v3 = vpop.eup %2384  ;;  %2410 = vpow2.f32 %v1622_v13  ;;  %v1585_v17 = vpop.xlane.xlu1 %1584  ;;  %v983_v9 = vmul.f32 %v3369_v54, %v3000_v40 }
 0x545   :  { %v3423_v33 = vpop.eup %2386  ;;  %2412 = vrcp.f32 %v1641_v16  ;;  %v1640_v23 = vadd.f32 1.0, %v2385_v3  ;;  %v1626_v35 = vmul.f32 1.442695, %v1600_v36  ;;  %v1603_v57 = vsub.f32 0.0, %v1585_v17 }
 0x546   :  { %v2389_v45 = vpop.eup %2388  ;;  %2414 = vpow2.f32 %v1628_v20  ;;  %v1583_v5 = vpop.xlane.xlu0 %1582  ;;  %v996_v16 = vadd.f32 %v980_v56, %v2944_v10  ;;  %v982_v36 = vmul.f32 %v3371_v26, %v3005_v60  ;;  %v984_v10 = vmul.f32 %v3375_v58, %v3015_v21 }
 0x547   :  { %v3428_v47 = vpop.eup %2390  ;;  %2416 = vrcp.f32 %v1640_v23  ;;  %v1643_v37 = vadd.f32 1.0, %v2389_v45  ;;  %v1632_v13 = vmul.f32 1.442695, %v1603_v57  ;;  %v1602_v59 = vsub.f32 0.0, %v1583_v5  ;;  %v3626_v5 = vld [vmem:[#allocation17_spill] sm:$0xff] }
 0x548   :  { %v2393_v46 = vpop.eup %2392  ;;  %2418 = vpow2.f32 %v1626_v35  ;;  %v1589_v51 = vpop.xlane.xlu1 %1588  ;;  %v999_v23 = vadd.f32 %v983_v9, %v2949_v24  ;;  %v1334_v60 = vmul.f32 %v3397_v63, %v3149_v39  ;;  %v998_v45 = vadd.f32 %v982_v36, %v2954_v41 }
 0x549   :  { %v3435_v40 = vpop.eup %2394  ;;  %2420 = vrcp.f32 %v1643_v37  ;;  %v1642_v54 = vadd.f32 1.0, %v2393_v46  ;;  %v1630_v20 = vmul.f32 1.442695, %v1602_v59  ;;  %v1605_v3 = vsub.f32 0.0, %v1589_v51  ;;  %v3628_v46 = vld [vmem:[#allocation27_spill] sm:$0xff] }
 0x54a   :  { %v2397_v17 = vpop.eup %2396  ;;  %2422 = vpow2.f32 %v1632_v13  ;;  %v1587_v26 = vpop.xlane.xlu0 %1586  ;;  %v1001_v37 = vadd.f32 %v985_v43, %v3626_v5  ;;  %v1333_v24 = vmul.f32 %v3399_v22, %v3152_v27  ;;  %v1295_v39 = vadd.f32 1.0, %v3405_v42  ;;  %v3627_v13 = vld [vmem:[#allocation18_spill] sm:$0xff] }
 0x54b   :  { %v3442_v6 = vpop.eup %2398  ;;  %2424 = vrcp.f32 %v1642_v54  ;;  %v1645_v48 = vadd.f32 1.0, %v2397_v17  ;;  %v1636_v56 = vmul.f32 1.442695, %v1605_v3  ;;  %v1604_v35 = vsub.f32 0.0, %v1587_v26 }
 0x54c   :  { %v2401_v57 = vpop.eup %2400  ;;  %2426 = vpow2.f32 %v1630_v20  ;;  %v1000_v59 = vadd.f32 %v984_v10, %v3627_v13  ;;  %v987_v51 = vmul.f32 %v3377_v1, %v3628_v46  ;;  %v1336_v41 = vmul.f32 %v3401_v19, %v3157_v11  ;;  %v3631_v13 = vld [vmem:[#allocation20_spill] sm:$0xff] }
 0x54d   :  { %v3448_v21 = vpop.eup %2402  ;;  %2428 = vrcp.f32 %v1645_v48  ;;  %v1644_v58 = vadd.f32 1.0, %v2401_v57  ;;  %v1634_v63 = vmul.f32 1.442695, %v1604_v35  ;;  %v1350_v27 = vadd.f32 %v1334_v60, %v997_v38  ;;  %v3629_v35 = vld [vmem:[#allocation28_spill] sm:$0xff] }
 0x54e   :  { %v2405_v9 = vpop.eup %2404  ;;  %2430 = vpow2.f32 %v1636_v56  ;;  %v1298_v22 = vadd.f32 1.0, %v3409_v29  ;;  %v1349_v54 = vadd.f32 %v1333_v24, %v996_v16  ;;  %v1335_v20 = vmul.f32 %v3403_v52, %v3162_v44 }
 0x54f   :  { %v2407_v36 = vpop.eup %2406  ;;  %v1687_v43 = vmul.f32 %v2405_v9, %v3276_v4  ;;  %2432 = vrcp.f32 %v1644_v58  ;;  %v1297_v1 = vadd.f32 1.0, %v3413_v2  ;;  %v1352_v10 = vadd.f32 %v1336_v41, %v999_v23  ;;  %v3632_v41 = vld [vmem:[#allocation29_spill] sm:$0xff] }
 0x550   :  { %v2409_v42 = vpop.eup %2408  ;;  %v1647_v3 = vadd.f32 1.0, %v2407_v36  ;;  %2434 = vpow2.f32 %v1634_v63  ;;  %v1338_v4 = vmul.f32 %v3407_v32, %v3167_v15  ;;  %v1300_v44 = vadd.f32 1.0, %v3419_v50  ;;  %v3633_v36 = vld [vmem:[#allocation30_spill] sm:$0xff] }
 0x551   :  { %v2411_v17 = vpop.eup %2410  ;;  %2436 = vrcp.f32 %v1295_v39  ;;  %v1703_v11 = vadd.f32 %v1687_v43, %v1350_v27  ;;  %v1686_v19 = vmul.f32 %v2409_v42, %v3279_v8  ;;  %v1351_v2 = vadd.f32 %v1335_v20, %v998_v45  ;;  %v3630_v39 = vld [vmem:[#allocation19_spill] sm:$0xff] }
 0x552   :  { %v2413_v38 = vpop.eup %2412  ;;  %2438 = vrcp.f32 %v1647_v3  ;;  %v1646_v29 = vadd.f32 1.0, %v2411_v17  ;;  %v1337_v8 = vmul.f32 %v3411_v31, %v3172_v12  ;;  %v1299_v15 = vadd.f32 1.0, %v3428_v47  ;;  %v3634_v20 = vld [vmem:[#allocation31_spill] sm:$0xff] }
 0x553   :  { %v2415_v16 = vpop.eup %2414  ;;  %2440 = vrcp.f32 %v1298_v22  ;;  %1719 = vst [vmem:[#allocation7 + $0x8] sm:$0xff] %v1703_v11  ;;  %v1702_v52 = vadd.f32 %v1686_v19, %v1349_v54  ;;  %v1689_v60 = vmul.f32 %v2413_v38, %v3284_v53  ;;  %v986_v57 = vmul.f32 %v3379_v55, %v3629_v35  ;;  %v3636_v19 = vld [vmem:[#allocation21_spill] sm:$0xff] }
 0x554   :  { %v2417_v26 = vpop.eup %2416  ;;  %2442 = vrcp.f32 %v1646_v29  ;;  %v1649_v23 = vadd.f32 1.0, %v2415_v16  ;;  %v1354_v53 = vadd.f32 %v1338_v4, %v1001_v37  ;;  %v1340_v12 = vmul.f32 %v3415_v18, %v3177_v30  ;;  %v3639_v16 = vld [vmem:[#allocation32_spill] sm:$0xff] }
 0x555   :  { %v2419_v48 = vpop.eup %2418  ;;  %2444 = vrcp.f32 %v1297_v1  ;;  %1718 = vst [vmem:[#allocation7] sm:$0xff] %v1702_v52  ;;  %v1705_v32 = vadd.f32 %v1689_v60, %v1352_v10  ;;  %v1688_v56 = vmul.f32 %v2417_v26, %v3289_v61  ;;  %v1003_v58 = vadd.f32 %v987_v51, %v3630_v39  ;;  %v3635_v1 = vld [vmem:[#allocation42_spill] sm:$0xff]  ;;  %v3637_v10 = vld [vmem:[#allocation35_spill] sm:$0xff] }
 0x556   :  { %v2421_v50 = vpop.eup %2420  ;;  %2446 = vrcp.f32 %v1649_v23  ;;  %v1648_v45 = vadd.f32 1.0, %v2419_v48  ;;  %v1353_v61 = vadd.f32 %v1337_v8, %v1000_v59  ;;  %v1339_v55 = vmul.f32 %v3423_v33, %v3182_v0  ;;  %v3642_v23 = vld [vmem:[#allocation43_spill] sm:$0xff]  ;;  %v2486_v39 = vld [vmem:[#allocation5 + $0x78] sm:$0xff] }
 0x557   :  { %v2423_v5 = vpop.eup %2422  ;;  %2448 = vrcp.f32 %v1300_v44  ;;  %1721 = vst [vmem:[#allocation7 + $0x18] sm:$0xff] %v1705_v32  ;;  %v1704_v31 = vadd.f32 %v1688_v56, %v1351_v2  ;;  %v1691_v47 = vmul.f32 %v2421_v50, %v3294_v34  ;;  %v1002_v46 = vadd.f32 %v986_v57, %v3631_v13  ;;  %v3640_v44 = vld [vmem:[#allocation53_spill] sm:$0xff]  ;;  %v3641_v2 = vld [vmem:[#allocation36_spill] sm:$0xff]  ;;  %v3645_v50 = vld [vmem:[#allocation54_spill] sm:$0xff] }
 0x558   :  { %v2425_v24 = vpop.eup %2424  ;;  %2450 = vrcp.f32 %v1648_v45  ;;  %v1651_v63 = vadd.f32 1.0, %v2423_v5  ;;  %v989_v34 = vmul.f32 %v3381_v49, %v3632_v41  ;;  %v988_v27 = vmul.f32 %v3383_v28, %v3633_v36  ;;  %v3644_v56 = vld [vmem:[#allocation33_spill] sm:$0xff] }
 0x559   :  { %v2427_v9 = vpop.eup %2426  ;;  %2452 = vrcp.f32 %v1299_v15  ;;  %1720 = vst [vmem:[#allocation7 + $0x10] sm:$0xff] %v1704_v31  ;;  %v1707_v37 = vadd.f32 %v1691_v47, %v1354_v53  ;;  %v1690_v30 = vmul.f32 %v2425_v24, %v3299_v62  ;;  %v1356_v22 = vadd.f32 %v1340_v12, %v1003_v58  ;;  %v3646_v45 = vld [vmem:[#allocation37_spill] sm:$0xff]  ;;  %v3647_v31 = vld [vmem:[#allocation44_spill] sm:$0xff] }
 0x55a   :  { %v2429_v18 = vpop.eup %2428  ;;  %2454 = vrcp.f32 %v1651_v63  ;;  %v1650_v51 = vadd.f32 1.0, %v2427_v9  ;;  %v1342_v62 = vmul.f32 %v3435_v40, %v3187_v25  ;;  %v991_v49 = vmul.f32 %v3385_v7, %v3634_v20  ;;  %v3638_v40 = vld [vmem:[#allocation22_spill] sm:$0xff]  ;;  %v3650_v63 = vld [vmem:[#allocation51_spill] sm:$0xff]  ;;  %v3655_v36 = vld [vmem:[#allocation45_spill] sm:$0xff] }
 0x55b   :  { %v2431_v59 = vpop.eup %2430  ;;  %1723 = vst [vmem:[#allocation7 + $0x28] sm:$0xff] %v1707_v37  ;;  %v1706_v0 = vadd.f32 %v1690_v30, %v1353_v61  ;;  %v1693_v33 = vmul.f32 %v2429_v18, %v3304_v14  ;;  %v1355_v3 = vadd.f32 %v1339_v55, %v1002_v46  ;;  %v1005_v38 = vadd.f32 %v989_v34, %v3636_v19  ;;  %v3649_v61 = vld [vmem:[#allocation13_spill] sm:$0xff]  ;;  %v3651_v55 = vld [vmem:[#allocation24_spill] sm:$0xff]  ;;  %v3652_v30 = vld [vmem:[#allocation34_spill] sm:$0xff] }
 0x55c   :  { %v2433_v43 = vpop.eup %2432  ;;  %2456 = vrcp.f32 %v1650_v51  ;;  %v1653_v42 = vadd.f32 1.0, %v2431_v59  ;;  %v1341_v14 = vmul.f32 %v3442_v6, %v3637_v10  ;;  %v1004_v29 = vadd.f32 %v988_v27, %v3638_v40  ;;  %v3643_v6 = vld [vmem:[#allocation23_spill] sm:$0xff]  ;;  %v3654_v34 = vld [vmem:[#allocation38_spill] sm:$0xff]  ;;  %v3659_v20 = vld [vmem:[#allocation25_spill] sm:$0xff] }
 0x55d   :  { %v2435_v54 = vpop.eup %2434  ;;  %1722 = vst [vmem:[#allocation7 + $0x20] sm:$0xff] %v1706_v0  ;;  %v1709_v17 = vadd.f32 %v1693_v33, %v1356_v22  ;;  %v1692_v28 = vmul.f32 %v2433_v43, %v3635_v1  ;;  %v990_v52 = vmul.f32 %v3640_v44, %v3639_v16  ;;  %v1358_v26 = vadd.f32 %v1342_v62, %v1005_v38  ;;  %v3653_v18 = vld [vmem:[#allocation55_spill] sm:$0xff]  ;;  %v2487_v0 = vld [vmem:[#allocation5 + $0x70] sm:$0xff]  ;;  %v3656_v33 = vld [vmem:[#allocation16_spill] sm:$0xff] }
 0x55e   :  { %v2437_v11 = vpop.eup %2436  ;;  %2458 = vrcp.f32 %v1653_v42  ;;  %v1652_v4 = vadd.f32 1.0, %v2435_v54  ;;  %v1344_v8 = vmul.f32 %v3448_v21, %v3641_v2  ;;  %v1007_v32 = vadd.f32 %v991_v49, %v3643_v6  ;;  %v3648_v21 = vld [vmem:[#allocation15_spill] sm:$0xff]  ;;  %v3657_v62 = vld [vmem:[#allocation14_spill] sm:$0xff]  ;;  %v3658_v42 = vld [vmem:[#allocation52_spill] sm:$0xff] }
 0x55f   :  { %v2439_v25 = vpop.eup %2438  ;;  %1725 = vst [vmem:[#allocation7 + $0x38] sm:$0xff] %v1709_v17  ;;  %v1708_v7 = vadd.f32 %v1692_v28, %v1355_v3  ;;  %v993_v35 = vmul.f32 %v3645_v50, %v3644_v56  ;;  %v1357_v53 = vadd.f32 %v1341_v14, %v1004_v29  ;;  %v1343_v5 = vmul.f32 %v2437_v11, %v3646_v45  ;;  %v3660_v3 = vld [vmem:[#allocation11_spill] sm:$0xff]  ;;  %v3661_v17 = vld [vmem:[#allocation56_spill] sm:$0xff]  ;;  %v3663_v14 = vld [vmem:[#allocation46_spill] sm:$0xff] }
 0x560   :  { %v2441_v60 = vpop.eup %2440  ;;  %v1695_v48 = vmul.f32 %v2439_v25, %v3642_v23  ;;  %2460 = vrcp.f32 %v1652_v4  ;;  %v305_v58 = vmul.f32 %v2486_v39, %v3648_v21  ;;  %v642_v9 = vmul.f32 %v3650_v63, %v3649_v61  ;;  %v3662_v19 = vld [vmem:[#allocation39_spill] sm:$0xff]  ;;  %v3664_v29 = vld [vmem:[#allocation26_spill] sm:$0xff]  ;;  %v3665_v44 = vld [vmem:[#allocation12_spill] sm:$0xff] }
 0x561   :  { %v2443_v15 = vpop.eup %2442  ;;  %1724 = vst [vmem:[#allocation7 + $0x30] sm:$0xff] %v1708_v7  ;;  %v1006_v37 = vadd.f32 %v990_v52, %v3651_v55  ;;  %v992_v13 = vmul.f32 %v3653_v18, %v3652_v30  ;;  %v1360_v41 = vadd.f32 %v1344_v8, %v1007_v32  ;;  %v1346_v51 = vmul.f32 %v2441_v60, %v3654_v34  ;;  %v3666_v52 = vld [vmem:[#allocation57_spill] sm:$0xff]  ;;  %v3668_v23 = vld [vmem:[#allocation47_spill] sm:$0xff]  ;;  %v3672_v63 = vld [vmem:[#allocation50_spill] sm:$0xff] }
 0x562   :  { %v2445_v57 = vpop.eup %2444  ;;  %v1711_v12 = vadd.f32 %v1695_v48, %v1358_v26  ;;  %v1694_v47 = vmul.f32 %v2443_v15, %v3647_v31  ;;  %v304_v43 = vmul.f32 %v2487_v0, %v3656_v33  ;;  %v641_v54 = vmul.f32 %v3658_v42, %v3657_v62  ;;  %v3667_v26 = vld [vmem:[#allocation40_spill] sm:$0xff]  ;;  %v3669_v50 = vld [vmem:[#allocation41_spill] sm:$0xff] }
 0x563   :  { %v2447_v24 = vpop.eup %2446  ;;  %v1009_v49 = vadd.f32 %v993_v35, %v3659_v20  ;;  %v995_v1 = vmul.f32 %v3661_v17, %v3660_v3  ;;  %v1359_v11 = vadd.f32 %v1343_v5, %v1006_v37  ;;  %v1345_v38 = vmul.f32 %v2445_v57, %v3662_v19 }
 0x564   :  { %v2449_v46 = vpop.eup %2448  ;;  %1727 = vst [vmem:[#allocation7 + $0x48] sm:$0xff] %v1711_v12  ;;  %v1710_v59 = vadd.f32 %v1694_v47, %v1357_v53  ;;  %v1697_v27 = vmul.f32 %v2447_v24, %v3655_v36  ;;  %v658_v40 = vadd.f32 %v642_v9, %v305_v58  ;;  %v1008_v16 = vadd.f32 %v992_v13, %v3664_v29  ;;  %v3670_v53 = vld [vmem:[#allocation48_spill] sm:$0xff]  ;;  %v3671_v24 = vld [vmem:[#allocation49_spill] sm:$0xff] }
 0x565   :  { %v2451_v22 = vpop.eup %2450  ;;  %v994_v7 = vmul.f32 %v3666_v52, %v3665_v44  ;;  %v1362_v60 = vadd.f32 %v1346_v51, %v1009_v49  ;;  %v1348_v2 = vmul.f32 %v2449_v46, %v3667_v26  ;;  %v657_v6 = vadd.f32 %v641_v54, %v304_v43 }
 0x566   :  { %v2453_v28 = vpop.eup %2452  ;;  %1726 = vst [vmem:[#allocation7 + $0x40] sm:$0xff] %v1710_v59  ;;  %v1713_v10 = vadd.f32 %v1697_v27, %v1360_v41  ;;  %v1696_v4 = vmul.f32 %v2451_v22, %v3663_v14  ;;  %v1011_v32 = vadd.f32 %v995_v1, %v658_v40  ;;  %v1361_v56 = vadd.f32 %v1345_v38, %v1008_v16 }
 0x567   :  { %v2455_v25 = vpop.eup %2454  ;;  %v1347_v35 = vmul.f32 %v2453_v28, %v3669_v50  ;;  %v1010_v12 = vadd.f32 %v994_v7, %v657_v6 }
 0x568   :  { %1729 = vst [vmem:[#allocation7 + $0x58] sm:$0xff] %v1713_v10  ;;  %v1712_v8 = vadd.f32 %v1696_v4, %v1359_v11  ;;  %v1699_v48 = vmul.f32 %v2455_v25, %v3668_v23  ;;  %v1364_v31 = vadd.f32 %v1348_v2, %v1011_v32 }
 0x569   :  { %v2457_v15 = vpop.eup %2456  ;;  %v1363_v58 = vadd.f32 %v1347_v35, %v1010_v12 }
 0x56a   :  { %1728 = vst [vmem:[#allocation7 + $0x50] sm:$0xff] %v1712_v8  ;;  %v1715_v57 = vadd.f32 %v1699_v48, %v1362_v60  ;;  %v1698_v45 = vmul.f32 %v2457_v15, %v3670_v53 }
 0x56b   :  { %v2459_v5 = vpop.eup %2458 }
 0x56c   :  { %1731 = vst [vmem:[#allocation7 + $0x68] sm:$0xff] %v1715_v57  ;;  %v1714_v47 = vadd.f32 %v1698_v45, %v1361_v56  ;;  %v1701_v39 = vmul.f32 %v2459_v5, %v3671_v24 }
 0x56d   :  { %v2461_v21 = vpop.eup %2460 }
 0x56e   :  { %1730 = vst [vmem:[#allocation7 + $0x60] sm:$0xff] %v1714_v47  ;;  %v1717_v61 = vadd.f32 %v1701_v39, %v1364_v31  ;;  %v1700_v9 = vmul.f32 %v2461_v21, %v3672_v63 }
 0x570   :  { %1733 = vst [vmem:[#allocation7 + $0x78] sm:$0xff] %v1717_v61  ;;  %v1716_v55 = vadd.f32 %v1700_v9, %v1363_v58 }
 0x572   :  { %1732 = vst [vmem:[#allocation7 + $0x70] sm:$0xff] %v1716_v55 }
 0x573   :  { %2539 = shalt.err (!%p2536_p0)
}
 0x574   :  { %1745 = dma.vmem_to_hbm [thread:$0]  %s1740_s26, 2048, %s3538_s3, [#allocation4], %s2555_s15, %s2555_s15, %s2556_s16  }
 0x575   :  { %2552 = dma.done.wait [#allocation4], 2048  }
 0x576   :  { %2553 = vsyncadd [#allocation4], 4294965248 }
 0x577   :  { %1749 = vsyncpa [#allocation3], 1 }
 0x578   :  { %1750 = vsyncpa [#allocation6], 1 }
 0x579   :  { %1751 = vsyncpa [#allocation4], 1 }

</bundles_post_ra>
